<compile_context>
chip_gen: v7x
topology: tpu7x:2x2x1
jax: 0.10.0
libtpu: 0.0.40
codegen_flags: <defaults>
</compile_context>

<pallas_src>
import math
import functools

import jax
import jax.numpy as jnp
from jax.experimental import pallas as pl
from jax.experimental.pallas import tpu as pltpu


# ----------------------------- in-kernel helpers -----------------------------

def _layer_norm(x, scale, bias, eps):
    mu = jnp.mean(x, axis=-1, keepdims=True)
    var = jnp.mean(jnp.square(x - mu), axis=-1, keepdims=True)
    return (x - mu) * jax.lax.rsqrt(var + eps) * scale + bias


# --------------------------- encoder stack kernel ----------------------------

def encoder_stack_kernel(x_ref, bias_ref,
                         ln1_s, ln1_b, wqkv, wo,
                         ln2_s, ln2_b, w1, b1, w2, b2,
                         lnf_s, lnf_b,
                         o_ref, x_vmem,
                         *, head_num, head_dim, hidden, eps):
    H = hidden
    layer = pl.program_id(0)
    n_layers = pl.num_programs(0)

    # Activations live in VMEM scratch across the sequential layer axis; only
    # the first step reads x from the input block, only the last writes output.
    @pl.when(layer == 0)
    def _():
        x_vmem[...] = x_ref[...]

    x = x_vmem[...]              # (BS, H) f32, BS = batch * seq
    bias = bias_ref[...]         # (BS, BS) additive mask (block-diag + pad keys)

    # --- self-attention sub-layer (pre-LN, residual) ---
    y = _layer_norm(x, ln1_s[0], ln1_b[0], eps)
    # Fused QKV projection; the 1/sqrt(head_dim) query scale is pre-folded into
    # the q columns of wqkv, so no per-head scaling is needed here.
    qkv = jnp.dot(y.astype(jnp.bfloat16), wqkv[0],
                  preferred_element_type=jnp.float32)          # (BS, 3H) f32

    wo_all = wo[0]                                             # (H, H) bf16
    attn = jnp.zeros_like(x)                                   # f32 accumulator
    for h in range(head_num):                                  # static unroll
        lo = h * head_dim
        qh = qkv[:, lo:lo + head_dim].astype(jnp.bfloat16)
        kh = qkv[:, H + lo:H + lo + head_dim].astype(jnp.bfloat16)
        vh = qkv[:, 2 * H + lo:2 * H + lo + head_dim].astype(jnp.bfloat16)

        # scores (BS, BS) = qh @ kh^T  (cross-batch pairs are killed by `bias`)
        s = jax.lax.dot_general(qh, kh, (((1,), (1,)), ((), ())),
                                preferred_element_type=jnp.float32)
        s = s + bias
        s = s - jnp.max(s, axis=-1, keepdims=True)
        p = jnp.exp(s)
        p = p * pl.reciprocal(jnp.sum(p, axis=-1, keepdims=True), approx=True)

        ctx = jnp.dot(p.astype(jnp.bfloat16), vh,
                      preferred_element_type=jnp.float32)      # (BS, head_dim)
        # Accumulate output projection per head: sum_h ctx_h @ Wo[h*d:(h+1)*d]
        # == concat(ctx_h) @ Wo  (avoids the lane-interleaving concatenate).
        attn = attn + jnp.dot(ctx.astype(jnp.bfloat16),
                              wo_all[lo:lo + head_dim, :],
                              preferred_element_type=jnp.float32)
    x = x + attn

    # --- feed-forward sub-layer (pre-LN, residual) ---
    y2 = _layer_norm(x, ln2_s[0], ln2_b[0], eps)
    h1 = jnp.dot(y2.astype(jnp.bfloat16), w1[0],
                 preferred_element_type=jnp.float32) + b1[0]
    h1 = jnp.maximum(h1, 0.0)
    ffn = jnp.dot(h1.astype(jnp.bfloat16), w2[0],
                  preferred_element_type=jnp.float32) + b2[0]
    out = x + ffn

    x_vmem[...] = out            # carry to the next layer

    # --- fused final LayerNorm, written only on the last layer ---
    @pl.when(layer == n_layers - 1)
    def _():
        o_ref[...] = _layer_norm(out, lnf_s[...], lnf_b[...], eps)


def encoder_stack(x2d, bias, p, lnf_s, lnf_b, head_num, eps=1e-6):
    BS, H = x2d.shape
    L = p["wqkv"].shape[0]
    I = p["w1"].shape[2]
    head_dim = H // head_num

    kernel = functools.partial(encoder_stack_kernel,
                               head_num=head_num, head_dim=head_dim,
                               hidden=H, eps=eps)

    # Advisory cost estimate for XLA scheduling of the surrounding glue ops.
    flops_per_layer = (2 * BS * H * 3 * H                         # fused QKV
                       + head_num * (4 * BS * BS * head_dim       # q@k^T and p@v
                                     + 2 * BS * head_dim * H)     # per-head Wo
                       + 2 * BS * H * I + 2 * BS * I * H)         # FFN
    transcendentals = L * (head_num * BS * BS + head_num * BS + 4 * BS)
    bytes_accessed = (2 * BS * H * 4 + BS * BS * 4                      # x, mask
                      + L * (H * 3 * H + H * H + H * I + I * H) * 2     # bf16 weights
                      + L * (I + 5 * H) * 4 + 2 * H * 4)                # biases, LN
    cost = pl.CostEstimate(flops=int(L * flops_per_layer),
                           transcendentals=int(transcendentals),
                           bytes_accessed=int(bytes_accessed))

    rep2 = lambda l: (0, 0)          # resident block across the layer axis
    per_layer = lambda l: (l, 0, 0)  # stream one layer's weights per grid step

    # Single launch, everything resident in VMEM (tiny model sizes).
    # TODO(synk): for large H/I (v7x: 64 MiB VMEM) the FFN would need to be
    # tiled over the inner dimension with a reduction grid axis.
    return pl.pallas_call(
        kernel,
        grid=(L,),
        in_specs=[
            pl.BlockSpec((BS, H), rep2),          # x
            pl.BlockSpec((BS, BS), rep2),         # additive attention bias
            pl.BlockSpec((1, 1, H), per_layer),   # ln1 scale
            pl.BlockSpec((1, 1, H), per_layer),   # ln1 bias
            pl.BlockSpec((1, H, 3 * H), per_layer),
            pl.BlockSpec((1, H, H), per_layer),   # wo
            pl.BlockSpec((1, 1, H), per_layer),   # ln2 scale
            pl.BlockSpec((1, 1, H), per_layer),   # ln2 bias
            pl.BlockSpec((1, H, I), per_layer),   # w1
            pl.BlockSpec((1, 1, I), per_layer),   # b1
            pl.BlockSpec((1, I, H), per_layer),   # w2
            pl.BlockSpec((1, 1, H), per_layer),   # b2
            pl.BlockSpec((1, H), rep2),           # final LN scale
            pl.BlockSpec((1, H), rep2),           # final LN bias
        ],
        out_specs=pl.BlockSpec((BS, H), rep2),
        out_shape=jax.ShapeDtypeStruct((BS, H), jnp.float32),
        scratch_shapes=[pltpu.VMEM((BS, H), jnp.float32)],
        compiler_params=pltpu.CompilerParams(
            dimension_semantics=("arbitrary",)),
        cost_estimate=cost,
    )(x2d, bias,
      p["ln1_s"], p["ln1_b"], p["wqkv"], p["wo"],
      p["ln2_s"], p["ln2_b"], p["w1"], p["b1"], p["w2"], p["b2"],
      lnf_s, lnf_b)


# ----------------------------- Executor wrapper ------------------------------

def position_encoding(seq_len, hidden):
    num_timescales = hidden // 2
    log_inc = math.log(10000.0 / 1.0) / max(num_timescales - 1, 1)
    inv = jnp.exp(jnp.arange(num_timescales, dtype=jnp.float32) * -log_inc)
    pos = jnp.arange(seq_len, dtype=jnp.float32)
    scaled = pos[:, None] * inv[None, :]
    signal = jnp.concatenate([jnp.sin(scaled), jnp.cos(scaled)], axis=1)
    if hidden % 2:
        signal = jnp.pad(signal, ((0, 0), (0, 1)))
    return signal.reshape(1, seq_len, hidden)


class ExecutorPallas:
    """JAX/Pallas port of `Executor` (eval mode: dropout = identity)."""

    def __init__(self, t_vocab_size, trg_pad_idx, head_num,
                 hidden_size=32, inner_size=64, encoder_n_layers=1,
                 key=jax.random.PRNGKey(0)):
        self.hidden_size = hidden_size
        self.emb_scale = hidden_size ** 0.5
        self.trg_pad_idx = trg_pad_idx
        self.head_num = head_num
        head_dim = hidden_size // head_num
        q_scale = 1.0 / math.sqrt(head_dim)

        keys = jax.random.split(key, 1 + 7 * encoder_n_layers)
        self.embedding = (0.02 * jax.random.normal(
            keys[0], (t_vocab_size, hidden_size))).astype(jnp.float32)

        H, I = hidden_size, inner_size
        ln1_s, ln1_b, wqkvs, wos, ln2_s, ln2_b = [], [], [], [], [], []
        w1s, b1s, w2s, b2s = [], [], [], []
        for l in range(encoder_n_layers):
            k = keys[1 + 7 * l: 1 + 7 * (l + 1)]
            wq = 0.02 * jax.random.normal(k[0], (H, H), jnp.float32)
            wk = 0.02 * jax.random.normal(k[1], (H, H), jnp.float32)
            wv = 0.02 * jax.random.normal(k[2], (H, H), jnp.float32)
            # Fold the attention scale into the q columns of the fused weight.
            wqkv = jnp.concatenate([wq * q_scale, wk, wv], axis=1)
            ln1_s.append(jnp.ones((1, H), jnp.float32))
            ln1_b.append(jnp.zeros((1, H), jnp.float32))
            wqkvs.append(wqkv.astype(jnp.bfloat16))
            wos.append((0.02 * jax.random.normal(k[3], (H, H), jnp.float32)
                        ).astype(jnp.bfloat16))
            ln2_s.append(jnp.ones((1, H), jnp.float32))
            ln2_b.append(jnp.zeros((1, H), jnp.float32))
            w1s.append((0.02 * jax.random.normal(k[4], (H, I), jnp.float32)
                        ).astype(jnp.bfloat16))
            b1s.append(jnp.zeros((1, I), jnp.float32))
            w2s.append((0.02 * jax.random.normal(k[5], (I, H), jnp.float32)
                        ).astype(jnp.bfloat16))
            b2s.append(jnp.zeros((1, H), jnp.float32))

        # Stacked per-layer weights -> one pallas_call with a layer grid axis.
        self.params = dict(
            ln1_s=jnp.stack(ln1_s), ln1_b=jnp.stack(ln1_b),
            wqkv=jnp.stack(wqkvs), wo=jnp.stack(wos),
            ln2_s=jnp.stack(ln2_s), ln2_b=jnp.stack(ln2_b),
            w1=jnp.stack(w1s), b1=jnp.stack(b1s),
            w2=jnp.stack(w2s), b2=jnp.stack(b2s),
        )
        self.last_s = jnp.ones((1, H), jnp.float32)
        self.last_b = jnp.zeros((1, H), jnp.float32)

    def __call__(self, inputs):
        # inputs: (B, S) int32 token ids
        B, S = inputs.shape
        H = self.hidden_size

        pad = inputs == self.trg_pad_idx                       # (B, S), True = pad
        emb = self.embedding[inputs]                           # gather (plain-JAX glue)
        emb = jnp.where(pad[..., None], 0.0, emb)              # masked_fill_
        emb = emb * self.emb_scale
        emb = emb + position_encoding(S, H)
        x = emb.astype(jnp.float32).reshape(B * S, H)          # dropout: identity (eval)

        # Additive attention bias over the flattened (B*S) key axis:
        #   -1e9 for cross-batch pairs (emulates per-batch attention) and for
        #   pad key positions; 0 otherwise.
        key_bias = jnp.where(pad, -1e9, 0.0).astype(jnp.float32)        # (B, S)
        same_batch = jnp.eye(B, dtype=bool)                             # (B, B)
        bias = jnp.where(same_batch[:, None, :, None],
                         key_bias[None, None, :, :], -1e9)              # (B,1,B,S)
        bias = jnp.broadcast_to(bias, (B, S, B, S)).reshape(B * S, B * S)

        out = encoder_stack(x, bias, self.params,
                            self.last_s, self.last_b, self.head_num)
        return out.reshape(B, S, H)


if __name__ == "__main__":
    B, S = 2, 8
    VOCAB, PAD, HEADS, HIDDEN, INNER, LAYERS = 32, 0, 4, 32, 64, 2

    key = jax.random.PRNGKey(0)
    k_tok, k_param = jax.random.split(key)

    tokens = jax.random.randint(k_tok, (B, S), 1, VOCAB, dtype=jnp.int32)
    tokens = tokens.at[1, -2:].set(PAD)     # give row 1 some padding positions

    model = ExecutorPallas(t_vocab_size=VOCAB, trg_pad_idx=PAD, head_num=HEADS,
                           hidden_size=HIDDEN, inner_size=INNER,
                           encoder_n_layers=LAYERS, key=k_param)

    out = model(tokens)
    jax.block_until_ready(out)
    assert out.shape == (B, S, HIDDEN)
    assert bool(jnp.all(jnp.isfinite(out)))
    print("KERNEL_OK")
</pallas_src>

<mosaic_0001>
module attributes {stable_mosaic.version = 11 : i64} {
  func.func @encoder_stack_kernel(%arg0: i32, %arg1: memref<16x32xf32, #tpu.memory_space<vmem>>, %arg2: memref<16x16xf32, #tpu.memory_space<vmem>>, %arg3: memref<1x1x32xf32, #tpu.memory_space<vmem>>, %arg4: memref<1x1x32xf32, #tpu.memory_space<vmem>>, %arg5: memref<1x32x96xbf16, #tpu.memory_space<vmem>>, %arg6: memref<1x32x32xbf16, #tpu.memory_space<vmem>>, %arg7: memref<1x1x32xf32, #tpu.memory_space<vmem>>, %arg8: memref<1x1x32xf32, #tpu.memory_space<vmem>>, %arg9: memref<1x32x64xbf16, #tpu.memory_space<vmem>>, %arg10: memref<1x1x64xf32, #tpu.memory_space<vmem>>, %arg11: memref<1x64x32xbf16, #tpu.memory_space<vmem>>, %arg12: memref<1x1x32xf32, #tpu.memory_space<vmem>>, %arg13: memref<1x32xf32, #tpu.memory_space<vmem>>, %arg14: memref<1x32xf32, #tpu.memory_space<vmem>>, %arg15: memref<16x32xf32, #tpu.memory_space<vmem>>, %arg16: memref<16x32xf32, #tpu.memory_space<vmem>>) attributes {dimension_semantics = [#tpu.dimension_semantics<arbitrary>], iteration_bounds = array<i64: 2>, scalar_prefetch = 0 : i64, scratch_operands = 1 : i64, tpu.core_type = #tpu.core_type<tc>, window_params = [{pipeline_mode = #tpu.pipeline_mode<synchronous>, transform_indices = @transform_0, window_bounds = array<i64: 16, 32>}, {pipeline_mode = #tpu.pipeline_mode<synchronous>, transform_indices = @transform_1, window_bounds = array<i64: 16, 16>}, {transform_indices = @transform_2, window_bounds = array<i64: 1, 1, 32>}, {transform_indices = @transform_3, window_bounds = array<i64: 1, 1, 32>}, {transform_indices = @transform_4, window_bounds = array<i64: 1, 32, 96>}, {transform_indices = @transform_5, window_bounds = array<i64: 1, 32, 32>}, {transform_indices = @transform_6, window_bounds = array<i64: 1, 1, 32>}, {transform_indices = @transform_7, window_bounds = array<i64: 1, 1, 32>}, {transform_indices = @transform_8, window_bounds = array<i64: 1, 32, 64>}, {transform_indices = @transform_9, window_bounds = array<i64: 1, 1, 64>}, {transform_indices = @transform_10, window_bounds = array<i64: 1, 64, 32>}, {transform_indices = @transform_11, window_bounds = array<i64: 1, 1, 32>}, {pipeline_mode = #tpu.pipeline_mode<synchronous>, transform_indices = @transform_12, window_bounds = array<i64: 1, 32>}, {pipeline_mode = #tpu.pipeline_mode<synchronous>, transform_indices = @transform_13, window_bounds = array<i64: 1, 32>}, {pipeline_mode = #tpu.pipeline_mode<synchronous>, transform_indices = @transform_14, window_bounds = array<i64: 16, 32>}]} {
    %c0_i32 = arith.constant 0 : i32
    %0 = arith.cmpi eq, %arg0, %c0_i32 : i32
    %1 = arith.extui %0 : i1 to i32
    %c0_i32_0 = arith.constant 0 : i32
    %2 = arith.cmpi ne, %1, %c0_i32_0 : i32
    scf.if %2 {
      %c0_71 = arith.constant 0 : index
      %c0_72 = arith.constant 0 : index
      %184 = vector.load %arg1[%c0_71, %c0_72] : memref<16x32xf32, #tpu.memory_space<vmem>>, vector<16x32xf32>
      %c0_73 = arith.constant 0 : index
      %c0_74 = arith.constant 0 : index
      %185 = vector.load %arg16[%c0_73, %c0_74] : memref<16x32xf32, #tpu.memory_space<vmem>>, vector<16x32xf32>
      tpu.vector_store %arg16[%c0_73, %c0_74], %184 {strides = array<i32>} : memref<16x32xf32, #tpu.memory_space<vmem>>, vector<16x32xf32>,
    } else {
    }
    %c0 = arith.constant 0 : index
    %c0_1 = arith.constant 0 : index
    %3 = vector.load %arg16[%c0, %c0_1] : memref<16x32xf32, #tpu.memory_space<vmem>>, vector<16x32xf32>
    %c0_2 = arith.constant 0 : index
    %c0_3 = arith.constant 0 : index
    %4 = vector.load %arg2[%c0_2, %c0_3] : memref<16x16xf32, #tpu.memory_space<vmem>>, vector<16x16xf32>
    %c0_4 = arith.constant 0 : index
    %c0_5 = arith.constant 0 : index
    %c0_6 = arith.constant 0 : index
    %5 = vector.load %arg3[%c0_4, %c0_5, %c0_6] : memref<1x1x32xf32, #tpu.memory_space<vmem>>, vector<1x1x32xf32>
    %6 = vector.shape_cast %5 : vector<1x1x32xf32> to vector<1x32xf32>
    %c0_7 = arith.constant 0 : index
    %c0_8 = arith.constant 0 : index
    %c0_9 = arith.constant 0 : index
    %7 = vector.load %arg4[%c0_7, %c0_8, %c0_9] : memref<1x1x32xf32, #tpu.memory_space<vmem>>, vector<1x1x32xf32>
    %8 = vector.shape_cast %7 : vector<1x1x32xf32> to vector<1x32xf32>
    %cst = arith.constant dense<0.000000e+00> : vector<16xf32>
    %9 = vector.multi_reduction <add>, %3, %cst [1] : vector<16x32xf32> to vector<16xf32>
    %10 = vector.shape_cast %9 : vector<16xf32> to vector<16x1xf32>
    %cst_10 = arith.constant 3.200000e+01 : f32
    %11 = vector.broadcast %cst_10 : f32 to vector<16x1xf32>
    %12 = arith.divf %10, %11 : vector<16x1xf32>
    %13 = vector.broadcast %12 : vector<16x1xf32> to vector<16x32xf32>
    %14 = arith.subf %3, %13 : vector<16x32xf32>
    %15 = arith.mulf %14, %14 : vector<16x32xf32>
    %cst_11 = arith.constant dense<0.000000e+00> : vector<16xf32>
    %16 = vector.multi_reduction <add>, %15, %cst_11 [1] : vector<16x32xf32> to vector<16xf32>
    %17 = vector.shape_cast %16 : vector<16xf32> to vector<16x1xf32>
    %cst_12 = arith.constant 3.200000e+01 : f32
    %18 = vector.broadcast %cst_12 : f32 to vector<16x1xf32>
    %19 = arith.divf %17, %18 : vector<16x1xf32>
    %20 = vector.broadcast %12 : vector<16x1xf32> to vector<16x32xf32>
    %21 = arith.subf %3, %20 : vector<16x32xf32>
    %cst_13 = arith.constant 9.99999997E-7 : f32
    %22 = vector.broadcast %cst_13 : f32 to vector<16x1xf32>
    %23 = arith.addf %19, %22 : vector<16x1xf32>
    %24 = math.rsqrt %23 : vector<16x1xf32>
    %25 = vector.broadcast %24 : vector<16x1xf32> to vector<16x32xf32>
    %26 = arith.mulf %21, %25 : vector<16x32xf32>
    %27 = vector.broadcast %6 : vector<1x32xf32> to vector<16x32xf32>
    %28 = arith.mulf %26, %27 : vector<16x32xf32>
    %29 = vector.broadcast %8 : vector<1x32xf32> to vector<16x32xf32>
    %30 = arith.addf %28, %29 : vector<16x32xf32>
    %31 = arith.truncf %30 : vector<16x32xf32> to vector<16x32xbf16>
    %c0_14 = arith.constant 0 : index
    %c0_15 = arith.constant 0 : index
    %c0_16 = arith.constant 0 : index
    %32 = vector.load %arg5[%c0_14, %c0_15, %c0_16] : memref<1x32x96xbf16, #tpu.memory_space<vmem>>, vector<1x32x96xbf16>
    %33 = vector.shape_cast %32 : vector<1x32x96xbf16> to vector<32x96xbf16>
    %cst_17 = arith.constant dense<0.000000e+00> : vector<16x96xf32>
    %34 = tpu.matmul %31, %33, %cst_17 {dimension_numbers = #tpu.dot_dimension_numbers<[1], [0], [0], [1], [0, 0, 1, 1], [], []>} : vector<16x32xbf16>, vector<32x96xbf16>, vector<16x96xf32> -> vector<16x96xf32>
    %c0_18 = arith.constant 0 : index
    %c0_19 = arith.constant 0 : index
    %c0_20 = arith.constant 0 : index
    %35 = vector.load %arg6[%c0_18, %c0_19, %c0_20] : memref<1x32x32xbf16, #tpu.memory_space<vmem>>, vector<1x32x32xbf16>
    %36 = vector.shape_cast %35 : vector<1x32x32xbf16> to vector<32x32xbf16>
    %cst_21 = arith.constant 0.000000e+00 : f32
    %37 = vector.broadcast %cst_21 : f32 to vector<16x32xf32>
    %38 = vector.extract_strided_slice %34 {offsets = [0, 0], sizes = [16, 8], strides = [1, 1]} : vector<16x96xf32> to vector<16x8xf32>
    %39 = arith.truncf %38 : vector<16x8xf32> to vector<16x8xbf16>
    %40 = vector.extract_strided_slice %34 {offsets = [0, 32], sizes = [16, 8], strides = [1, 1]} : vector<16x96xf32> to vector<16x8xf32>
    %41 = arith.truncf %40 : vector<16x8xf32> to vector<16x8xbf16>
    %42 = vector.extract_strided_slice %34 {offsets = [0, 64], sizes = [16, 8], strides = [1, 1]} : vector<16x96xf32> to vector<16x8xf32>
    %43 = arith.truncf %42 : vector<16x8xf32> to vector<16x8xbf16>
    %cst_22 = arith.constant dense<0.000000e+00> : vector<16x16xf32>
    %44 = tpu.matmul %39, %41, %cst_22 {dimension_numbers = #tpu.dot_dimension_numbers<[1], [1], [0], [0], [0, 0, 1, 0], [], []>} : vector<16x8xbf16>, vector<16x8xbf16>, vector<16x16xf32> -> vector<16x16xf32>
    %45 = arith.addf %44, %4 : vector<16x16xf32>
    %cst_23 = arith.constant dense<0xFF800000> : vector<16xf32>
    %46 = vector.multi_reduction <maximumf>, %45, %cst_23 [1] : vector<16x16xf32> to vector<16xf32>
    %47 = vector.shape_cast %46 : vector<16xf32> to vector<16x1xf32>
    %48 = vector.broadcast %47 : vector<16x1xf32> to vector<16x16xf32>
    %49 = arith.subf %45, %48 : vector<16x16xf32>
    %50 = math.exp %49 : vector<16x16xf32>
    %cst_24 = arith.constant dense<0.000000e+00> : vector<16xf32>
    %51 = vector.multi_reduction <add>, %50, %cst_24 [1] : vector<16x16xf32> to vector<16xf32>
    %52 = vector.shape_cast %51 : vector<16xf32> to vector<16x1xf32>
    %53 = tpu.reciprocal %52 {approx = true} : vector<16x1xf32> -> vector<16x1xf32>
    %54 = vector.broadcast %53 : vector<16x1xf32> to vector<16x16xf32>
    %55 = arith.mulf %50, %54 : vector<16x16xf32>
    %56 = arith.truncf %55 : vector<16x16xf32> to vector<16x16xbf16>
    %cst_25 = arith.constant dense<0.000000e+00> : vector<16x8xf32>
    %57 = tpu.matmul %56, %43, %cst_25 {dimension_numbers = #tpu.dot_dimension_numbers<[1], [0], [0], [1], [0, 0, 1, 1], [], []>} : vector<16x16xbf16>, vector<16x8xbf16>, vector<16x8xf32> -> vector<16x8xf32>
    %58 = arith.truncf %57 : vector<16x8xf32> to vector<16x8xbf16>
    %59 = vector.extract_strided_slice %36 {offsets = [0, 0], sizes = [8, 32], strides = [1, 1]} : vector<32x32xbf16> to vector<8x32xbf16>
    %cst_26 = arith.constant dense<0.000000e+00> : vector<16x32xf32>
    %60 = tpu.matmul %58, %59, %cst_26 {dimension_numbers = #tpu.dot_dimension_numbers<[1], [0], [0], [1], [0, 0, 1, 1], [], []>} : vector<16x8xbf16>, vector<8x32xbf16>, vector<16x32xf32> -> vector<16x32xf32>
    %61 = arith.addf %37, %60 : vector<16x32xf32>
    %62 = vector.extract_strided_slice %34 {offsets = [0, 8], sizes = [16, 8], strides = [1, 1]} : vector<16x96xf32> to vector<16x8xf32>
    %63 = arith.truncf %62 : vector<16x8xf32> to vector<16x8xbf16>
    %64 = vector.extract_strided_slice %34 {offsets = [0, 40], sizes = [16, 8], strides = [1, 1]} : vector<16x96xf32> to vector<16x8xf32>
    %65 = arith.truncf %64 : vector<16x8xf32> to vector<16x8xbf16>
    %66 = vector.extract_strided_slice %34 {offsets = [0, 72], sizes = [16, 8], strides = [1, 1]} : vector<16x96xf32> to vector<16x8xf32>
    %67 = arith.truncf %66 : vector<16x8xf32> to vector<16x8xbf16>
    %cst_27 = arith.constant dense<0.000000e+00> : vector<16x16xf32>
    %68 = tpu.matmul %63, %65, %cst_27 {dimension_numbers = #tpu.dot_dimension_numbers<[1], [1], [0], [0], [0, 0, 1, 0], [], []>} : vector<16x8xbf16>, vector<16x8xbf16>, vector<16x16xf32> -> vector<16x16xf32>
    %69 = arith.addf %68, %4 : vector<16x16xf32>
    %cst_28 = arith.constant dense<0xFF800000> : vector<16xf32>
    %70 = vector.multi_reduction <maximumf>, %69, %cst_28 [1] : vector<16x16xf32> to vector<16xf32>
    %71 = vector.shape_cast %70 : vector<16xf32> to vector<16x1xf32>
    %72 = vector.broadcast %71 : vector<16x1xf32> to vector<16x16xf32>
    %73 = arith.subf %69, %72 : vector<16x16xf32>
    %74 = math.exp %73 : vector<16x16xf32>
    %cst_29 = arith.constant dense<0.000000e+00> : vector<16xf32>
    %75 = vector.multi_reduction <add>, %74, %cst_29 [1] : vector<16x16xf32> to vector<16xf32>
    %76 = vector.shape_cast %75 : vector<16xf32> to vector<16x1xf32>
    %77 = tpu.reciprocal %76 {approx = true} : vector<16x1xf32> -> vector<16x1xf32>
    %78 = vector.broadcast %77 : vector<16x1xf32> to vector<16x16xf32>
    %79 = arith.mulf %74, %78 : vector<16x16xf32>
    %80 = arith.truncf %79 : vector<16x16xf32> to vector<16x16xbf16>
    %cst_30 = arith.constant dense<0.000000e+00> : vector<16x8xf32>
    %81 = tpu.matmul %80, %67, %cst_30 {dimension_numbers = #tpu.dot_dimension_numbers<[1], [0], [0], [1], [0, 0, 1, 1], [], []>} : vector<16x16xbf16>, vector<16x8xbf16>, vector<16x8xf32> -> vector<16x8xf32>
    %82 = arith.truncf %81 : vector<16x8xf32> to vector<16x8xbf16>
    %83 = vector.extract_strided_slice %36 {offsets = [8, 0], sizes = [8, 32], strides = [1, 1]} : vector<32x32xbf16> to vector<8x32xbf16>
    %cst_31 = arith.constant dense<0.000000e+00> : vector<16x32xf32>
    %84 = tpu.matmul %82, %83, %cst_31 {dimension_numbers = #tpu.dot_dimension_numbers<[1], [0], [0], [1], [0, 0, 1, 1], [], []>} : vector<16x8xbf16>, vector<8x32xbf16>, vector<16x32xf32> -> vector<16x32xf32>
    %85 = arith.addf %61, %84 : vector<16x32xf32>
    %86 = vector.extract_strided_slice %34 {offsets = [0, 16], sizes = [16, 8], strides = [1, 1]} : vector<16x96xf32> to vector<16x8xf32>
    %87 = arith.truncf %86 : vector<16x8xf32> to vector<16x8xbf16>
    %88 = vector.extract_strided_slice %34 {offsets = [0, 48], sizes = [16, 8], strides = [1, 1]} : vector<16x96xf32> to vector<16x8xf32>
    %89 = arith.truncf %88 : vector<16x8xf32> to vector<16x8xbf16>
    %90 = vector.extract_strided_slice %34 {offsets = [0, 80], sizes = [16, 8], strides = [1, 1]} : vector<16x96xf32> to vector<16x8xf32>
    %91 = arith.truncf %90 : vector<16x8xf32> to vector<16x8xbf16>
    %cst_32 = arith.constant dense<0.000000e+00> : vector<16x16xf32>
    %92 = tpu.matmul %87, %89, %cst_32 {dimension_numbers = #tpu.dot_dimension_numbers<[1], [1], [0], [0], [0, 0, 1, 0], [], []>} : vector<16x8xbf16>, vector<16x8xbf16>, vector<16x16xf32> -> vector<16x16xf32>
    %93 = arith.addf %92, %4 : vector<16x16xf32>
    %cst_33 = arith.constant dense<0xFF800000> : vector<16xf32>
    %94 = vector.multi_reduction <maximumf>, %93, %cst_33 [1] : vector<16x16xf32> to vector<16xf32>
    %95 = vector.shape_cast %94 : vector<16xf32> to vector<16x1xf32>
    %96 = vector.broadcast %95 : vector<16x1xf32> to vector<16x16xf32>
    %97 = arith.subf %93, %96 : vector<16x16xf32>
    %98 = math.exp %97 : vector<16x16xf32>
    %cst_34 = arith.constant dense<0.000000e+00> : vector<16xf32>
    %99 = vector.multi_reduction <add>, %98, %cst_34 [1] : vector<16x16xf32> to vector<16xf32>
    %100 = vector.shape_cast %99 : vector<16xf32> to vector<16x1xf32>
    %101 = tpu.reciprocal %100 {approx = true} : vector<16x1xf32> -> vector<16x1xf32>
    %102 = vector.broadcast %101 : vector<16x1xf32> to vector<16x16xf32>
    %103 = arith.mulf %98, %102 : vector<16x16xf32>
    %104 = arith.truncf %103 : vector<16x16xf32> to vector<16x16xbf16>
    %cst_35 = arith.constant dense<0.000000e+00> : vector<16x8xf32>
    %105 = tpu.matmul %104, %91, %cst_35 {dimension_numbers = #tpu.dot_dimension_numbers<[1], [0], [0], [1], [0, 0, 1, 1], [], []>} : vector<16x16xbf16>, vector<16x8xbf16>, vector<16x8xf32> -> vector<16x8xf32>
    %106 = arith.truncf %105 : vector<16x8xf32> to vector<16x8xbf16>
    %107 = vector.extract_strided_slice %36 {offsets = [16, 0], sizes = [8, 32], strides = [1, 1]} : vector<32x32xbf16> to vector<8x32xbf16>
    %cst_36 = arith.constant dense<0.000000e+00> : vector<16x32xf32>
    %108 = tpu.matmul %106, %107, %cst_36 {dimension_numbers = #tpu.dot_dimension_numbers<[1], [0], [0], [1], [0, 0, 1, 1], [], []>} : vector<16x8xbf16>, vector<8x32xbf16>, vector<16x32xf32> -> vector<16x32xf32>
    %109 = arith.addf %85, %108 : vector<16x32xf32>
    %110 = vector.extract_strided_slice %34 {offsets = [0, 24], sizes = [16, 8], strides = [1, 1]} : vector<16x96xf32> to vector<16x8xf32>
    %111 = arith.truncf %110 : vector<16x8xf32> to vector<16x8xbf16>
    %112 = vector.extract_strided_slice %34 {offsets = [0, 56], sizes = [16, 8], strides = [1, 1]} : vector<16x96xf32> to vector<16x8xf32>
    %113 = arith.truncf %112 : vector<16x8xf32> to vector<16x8xbf16>
    %114 = vector.extract_strided_slice %34 {offsets = [0, 88], sizes = [16, 8], strides = [1, 1]} : vector<16x96xf32> to vector<16x8xf32>
    %115 = arith.truncf %114 : vector<16x8xf32> to vector<16x8xbf16>
    %cst_37 = arith.constant dense<0.000000e+00> : vector<16x16xf32>
    %116 = tpu.matmul %111, %113, %cst_37 {dimension_numbers = #tpu.dot_dimension_numbers<[1], [1], [0], [0], [0, 0, 1, 0], [], []>} : vector<16x8xbf16>, vector<16x8xbf16>, vector<16x16xf32> -> vector<16x16xf32>
    %117 = arith.addf %116, %4 : vector<16x16xf32>
    %cst_38 = arith.constant dense<0xFF800000> : vector<16xf32>
    %118 = vector.multi_reduction <maximumf>, %117, %cst_38 [1] : vector<16x16xf32> to vector<16xf32>
    %119 = vector.shape_cast %118 : vector<16xf32> to vector<16x1xf32>
    %120 = vector.broadcast %119 : vector<16x1xf32> to vector<16x16xf32>
    %121 = arith.subf %117, %120 : vector<16x16xf32>
    %122 = math.exp %121 : vector<16x16xf32>
    %cst_39 = arith.constant dense<0.000000e+00> : vector<16xf32>
    %123 = vector.multi_reduction <add>, %122, %cst_39 [1] : vector<16x16xf32> to vector<16xf32>
    %124 = vector.shape_cast %123 : vector<16xf32> to vector<16x1xf32>
    %125 = tpu.reciprocal %124 {approx = true} : vector<16x1xf32> -> vector<16x1xf32>
    %126 = vector.broadcast %125 : vector<16x1xf32> to vector<16x16xf32>
    %127 = arith.mulf %122, %126 : vector<16x16xf32>
    %128 = arith.truncf %127 : vector<16x16xf32> to vector<16x16xbf16>
    %cst_40 = arith.constant dense<0.000000e+00> : vector<16x8xf32>
    %129 = tpu.matmul %128, %115, %cst_40 {dimension_numbers = #tpu.dot_dimension_numbers<[1], [0], [0], [1], [0, 0, 1, 1], [], []>} : vector<16x16xbf16>, vector<16x8xbf16>, vector<16x8xf32> -> vector<16x8xf32>
    %130 = arith.truncf %129 : vector<16x8xf32> to vector<16x8xbf16>
    %131 = vector.extract_strided_slice %36 {offsets = [24, 0], sizes = [8, 32], strides = [1, 1]} : vector<32x32xbf16> to vector<8x32xbf16>
    %cst_41 = arith.constant dense<0.000000e+00> : vector<16x32xf32>
    %132 = tpu.matmul %130, %131, %cst_41 {dimension_numbers = #tpu.dot_dimension_numbers<[1], [0], [0], [1], [0, 0, 1, 1], [], []>} : vector<16x8xbf16>, vector<8x32xbf16>, vector<16x32xf32> -> vector<16x32xf32>
    %133 = arith.addf %109, %132 : vector<16x32xf32>
    %134 = arith.addf %3, %133 : vector<16x32xf32>
    %c0_42 = arith.constant 0 : index
    %c0_43 = arith.constant 0 : index
    %c0_44 = arith.constant 0 : index
    %135 = vector.load %arg7[%c0_42, %c0_43, %c0_44] : memref<1x1x32xf32, #tpu.memory_space<vmem>>, vector<1x1x32xf32>
    %136 = vector.shape_cast %135 : vector<1x1x32xf32> to vector<1x32xf32>
    %c0_45 = arith.constant 0 : index
    %c0_46 = arith.constant 0 : index
    %c0_47 = arith.constant 0 : index
    %137 = vector.load %arg8[%c0_45, %c0_46, %c0_47] : memref<1x1x32xf32, #tpu.memory_space<vmem>>, vector<1x1x32xf32>
    %138 = vector.shape_cast %137 : vector<1x1x32xf32> to vector<1x32xf32>
    %cst_48 = arith.constant dense<0.000000e+00> : vector<16xf32>
    %139 = vector.multi_reduction <add>, %134, %cst_48 [1] : vector<16x32xf32> to vector<16xf32>
    %140 = vector.shape_cast %139 : vector<16xf32> to vector<16x1xf32>
    %cst_49 = arith.constant 3.200000e+01 : f32
    %141 = vector.broadcast %cst_49 : f32 to vector<16x1xf32>
    %142 = arith.divf %140, %141 : vector<16x1xf32>
    %143 = vector.broadcast %142 : vector<16x1xf32> to vector<16x32xf32>
    %144 = arith.subf %134, %143 : vector<16x32xf32>
    %145 = arith.mulf %144, %144 : vector<16x32xf32>
    %cst_50 = arith.constant dense<0.000000e+00> : vector<16xf32>
    %146 = vector.multi_reduction <add>, %145, %cst_50 [1] : vector<16x32xf32> to vector<16xf32>
    %147 = vector.shape_cast %146 : vector<16xf32> to vector<16x1xf32>
    %cst_51 = arith.constant 3.200000e+01 : f32
    %148 = vector.broadcast %cst_51 : f32 to vector<16x1xf32>
    %149 = arith.divf %147, %148 : vector<16x1xf32>
    %150 = vector.broadcast %142 : vector<16x1xf32> to vector<16x32xf32>
    %151 = arith.subf %134, %150 : vector<16x32xf32>
    %cst_52 = arith.constant 9.99999997E-7 : f32
    %152 = vector.broadcast %cst_52 : f32 to vector<16x1xf32>
    %153 = arith.addf %149, %152 : vector<16x1xf32>
    %154 = math.rsqrt %153 : vector<16x1xf32>
    %155 = vector.broadcast %154 : vector<16x1xf32> to vector<16x32xf32>
    %156 = arith.mulf %151, %155 : vector<16x32xf32>
    %157 = vector.broadcast %136 : vector<1x32xf32> to vector<16x32xf32>
    %158 = arith.mulf %156, %157 : vector<16x32xf32>
    %159 = vector.broadcast %138 : vector<1x32xf32> to vector<16x32xf32>
    %160 = arith.addf %158, %159 : vector<16x32xf32>
    %161 = arith.truncf %160 : vector<16x32xf32> to vector<16x32xbf16>
    %c0_53 = arith.constant 0 : index
    %c0_54 = arith.constant 0 : index
    %c0_55 = arith.constant 0 : index
    %162 = vector.load %arg9[%c0_53, %c0_54, %c0_55] : memref<1x32x64xbf16, #tpu.memory_space<vmem>>, vector<1x32x64xbf16>
    %163 = vector.shape_cast %162 : vector<1x32x64xbf16> to vector<32x64xbf16>
    %cst_56 = arith.constant dense<0.000000e+00> : vector<16x64xf32>
    %164 = tpu.matmul %161, %163, %cst_56 {dimension_numbers = #tpu.dot_dimension_numbers<[1], [0], [0], [1], [0, 0, 1, 1], [], []>} : vector<16x32xbf16>, vector<32x64xbf16>, vector<16x64xf32> -> vector<16x64xf32>
    %c0_57 = arith.constant 0 : index
    %c0_58 = arith.constant 0 : index
    %c0_59 = arith.constant 0 : index
    %165 = vector.load %arg10[%c0_57, %c0_58, %c0_59] : memref<1x1x64xf32, #tpu.memory_space<vmem>>, vector<1x1x64xf32>
    %166 = vector.shape_cast %165 : vector<1x1x64xf32> to vector<1x64xf32>
    %167 = vector.broadcast %166 : vector<1x64xf32> to vector<16x64xf32>
    %168 = arith.addf %164, %167 : vector<16x64xf32>
    %cst_60 = arith.constant 0.000000e+00 : f32
    %169 = vector.broadcast %cst_60 : f32 to vector<16x64xf32>
    %170 = arith.maximumf %168, %169 : vector<16x64xf32>
    %171 = arith.truncf %170 : vector<16x64xf32> to vector<16x64xbf16>
    %c0_61 = arith.constant 0 : index
    %c0_62 = arith.constant 0 : index
    %c0_63 = arith.constant 0 : index
    %172 = vector.load %arg11[%c0_61, %c0_62, %c0_63] : memref<1x64x32xbf16, #tpu.memory_space<vmem>>, vector<1x64x32xbf16>
    %173 = vector.shape_cast %172 : vector<1x64x32xbf16> to vector<64x32xbf16>
    %cst_64 = arith.constant dense<0.000000e+00> : vector<16x32xf32>
    %174 = tpu.matmul %171, %173, %cst_64 {dimension_numbers = #tpu.dot_dimension_numbers<[1], [0], [0], [1], [0, 0, 1, 1], [], []>} : vector<16x64xbf16>, vector<64x32xbf16>, vector<16x32xf32> -> vector<16x32xf32>
    %c0_65 = arith.constant 0 : index
    %c0_66 = arith.constant 0 : index
    %c0_67 = arith.constant 0 : index
    %175 = vector.load %arg12[%c0_65, %c0_66, %c0_67] : memref<1x1x32xf32, #tpu.memory_space<vmem>>, vector<1x1x32xf32>
    %176 = vector.shape_cast %175 : vector<1x1x32xf32> to vector<1x32xf32>
    %177 = vector.broadcast %176 : vector<1x32xf32> to vector<16x32xf32>
    %178 = arith.addf %174, %177 : vector<16x32xf32>
    %179 = arith.addf %134, %178 : vector<16x32xf32>
    %c0_68 = arith.constant 0 : index
    %c0_69 = arith.constant 0 : index
    %180 = vector.load %arg16[%c0_68, %c0_69] : memref<16x32xf32, #tpu.memory_space<vmem>>, vector<16x32xf32>
    tpu.vector_store %arg16[%c0_68, %c0_69], %179 {strides = array<i32>} : memref<16x32xf32, #tpu.memory_space<vmem>>, vector<16x32xf32>,
    %c1_i32 = arith.constant 1 : i32
    %181 = arith.cmpi eq, %arg0, %c1_i32 : i32
    %182 = arith.extui %181 : i1 to i32
    %c0_i32_70 = arith.constant 0 : i32
    %183 = arith.cmpi ne, %182, %c0_i32_70 : i32
    scf.if %183 {
      %c0_71 = arith.constant 0 : index
      %c0_72 = arith.constant 0 : index
      %184 = vector.load %arg13[%c0_71, %c0_72] : memref<1x32xf32, #tpu.memory_space<vmem>>, vector<1x32xf32>
      %c0_73 = arith.constant 0 : index
      %c0_74 = arith.constant 0 : index
      %185 = vector.load %arg14[%c0_73, %c0_74] : memref<1x32xf32, #tpu.memory_space<vmem>>, vector<1x32xf32>
      %cst_75 = arith.constant dense<0.000000e+00> : vector<16xf32>
      %186 = vector.multi_reduction <add>, %179, %cst_75 [1] : vector<16x32xf32> to vector<16xf32>
      %187 = vector.shape_cast %186 : vector<16xf32> to vector<16x1xf32>
      %cst_76 = arith.constant 3.200000e+01 : f32
      %188 = vector.broadcast %cst_76 : f32 to vector<16x1xf32>
      %189 = arith.divf %187, %188 : vector<16x1xf32>
      %190 = vector.broadcast %189 : vector<16x1xf32> to vector<16x32xf32>
      %191 = arith.subf %179, %190 : vector<16x32xf32>
      %192 = arith.mulf %191, %191 : vector<16x32xf32>
      %cst_77 = arith.constant dense<0.000000e+00> : vector<16xf32>
      %193 = vector.multi_reduction <add>, %192, %cst_77 [1] : vector<16x32xf32> to vector<16xf32>
      %194 = vector.shape_cast %193 : vector<16xf32> to vector<16x1xf32>
      %cst_78 = arith.constant 3.200000e+01 : f32
      %195 = vector.broadcast %cst_78 : f32 to vector<16x1xf32>
      %196 = arith.divf %194, %195 : vector<16x1xf32>
      %197 = vector.broadcast %189 : vector<16x1xf32> to vector<16x32xf32>
      %198 = arith.subf %179, %197 : vector<16x32xf32>
      %cst_79 = arith.constant 9.99999997E-7 : f32
      %199 = vector.broadcast %cst_79 : f32 to vector<16x1xf32>
      %200 = arith.addf %196, %199 : vector<16x1xf32>
      %201 = math.rsqrt %200 : vector<16x1xf32>
      %202 = vector.broadcast %201 : vector<16x1xf32> to vector<16x32xf32>
      %203 = arith.mulf %198, %202 : vector<16x32xf32>
      %204 = vector.broadcast %184 : vector<1x32xf32> to vector<16x32xf32>
      %205 = arith.mulf %203, %204 : vector<16x32xf32>
      %206 = vector.broadcast %185 : vector<1x32xf32> to vector<16x32xf32>
      %207 = arith.addf %205, %206 : vector<16x32xf32>
      %c0_80 = arith.constant 0 : index
      %c0_81 = arith.constant 0 : index
      %208 = vector.load %arg15[%c0_80, %c0_81] : memref<16x32xf32, #tpu.memory_space<vmem>>, vector<16x32xf32>
      tpu.vector_store %arg15[%c0_80, %c0_81], %207 {strides = array<i32>} : memref<16x32xf32, #tpu.memory_space<vmem>>, vector<16x32xf32>,
    } else {
    }
    return
  }
  func.func @transform_0(%arg0: i32) -> (i32, i32) {
    %c0_i32 = arith.constant 0 : i32
    %c0_i32_0 = arith.constant 0 : i32
    %c0_i32_1 = arith.constant 0 : i32
    return %c0_i32, %c0_i32_0 : i32, i32
  }
  func.func @transform_1(%arg0: i32) -> (i32, i32) {
    %c0_i32 = arith.constant 0 : i32
    %c0_i32_0 = arith.constant 0 : i32
    %c0_i32_1 = arith.constant 0 : i32
    return %c0_i32, %c0_i32_0 : i32, i32
  }
  func.func @transform_2(%arg0: i32) -> (i32, i32, i32) {
    %c0_i32 = arith.constant 0 : i32
    %c0_i32_0 = arith.constant 0 : i32
    %c0_i32_1 = arith.constant 0 : i32
    return %arg0, %c0_i32, %c0_i32_0 : i32, i32, i32
  }
  func.func @transform_3(%arg0: i32) -> (i32, i32, i32) {
    %c0_i32 = arith.constant 0 : i32
    %c0_i32_0 = arith.constant 0 : i32
    %c0_i32_1 = arith.constant 0 : i32
    return %arg0, %c0_i32, %c0_i32_0 : i32, i32, i32
  }
  func.func @transform_4(%arg0: i32) -> (i32, i32, i32) {
    %c0_i32 = arith.constant 0 : i32
    %c0_i32_0 = arith.constant 0 : i32
    %c0_i32_1 = arith.constant 0 : i32
    return %arg0, %c0_i32, %c0_i32_0 : i32, i32, i32
  }
  func.func @transform_5(%arg0: i32) -> (i32, i32, i32) {
    %c0_i32 = arith.constant 0 : i32
    %c0_i32_0 = arith.constant 0 : i32
    %c0_i32_1 = arith.constant 0 : i32
    return %arg0, %c0_i32, %c0_i32_0 : i32, i32, i32
  }
  func.func @transform_6(%arg0: i32) -> (i32, i32, i32) {
    %c0_i32 = arith.constant 0 : i32
    %c0_i32_0 = arith.constant 0 : i32
    %c0_i32_1 = arith.constant 0 : i32
    return %arg0, %c0_i32, %c0_i32_0 : i32, i32, i32
  }
  func.func @transform_7(%arg0: i32) -> (i32, i32, i32) {
    %c0_i32 = arith.constant 0 : i32
    %c0_i32_0 = arith.constant 0 : i32
    %c0_i32_1 = arith.constant 0 : i32
    return %arg0, %c0_i32, %c0_i32_0 : i32, i32, i32
  }
  func.func @transform_8(%arg0: i32) -> (i32, i32, i32) {
    %c0_i32 = arith.constant 0 : i32
    %c0_i32_0 = arith.constant 0 : i32
    %c0_i32_1 = arith.constant 0 : i32
    return %arg0, %c0_i32, %c0_i32_0 : i32, i32, i32
  }
  func.func @transform_9(%arg0: i32) -> (i32, i32, i32) {
    %c0_i32 = arith.constant 0 : i32
    %c0_i32_0 = arith.constant 0 : i32
    %c0_i32_1 = arith.constant 0 : i32
    return %arg0, %c0_i32, %c0_i32_0 : i32, i32, i32
  }
  func.func @transform_10(%arg0: i32) -> (i32, i32, i32) {
    %c0_i32 = arith.constant 0 : i32
    %c0_i32_0 = arith.constant 0 : i32
    %c0_i32_1 = arith.constant 0 : i32
    return %arg0, %c0_i32, %c0_i32_0 : i32, i32, i32
  }
  func.func @transform_11(%arg0: i32) -> (i32, i32, i32) {
    %c0_i32 = arith.constant 0 : i32
    %c0_i32_0 = arith.constant 0 : i32
    %c0_i32_1 = arith.constant 0 : i32
    return %arg0, %c0_i32, %c0_i32_0 : i32, i32, i32
  }
  func.func @transform_12(%arg0: i32) -> (i32, i32) {
    %c0_i32 = arith.constant 0 : i32
    %c0_i32_0 = arith.constant 0 : i32
    %c0_i32_1 = arith.constant 0 : i32
    return %c0_i32, %c0_i32_0 : i32, i32
  }
  func.func @transform_13(%arg0: i32) -> (i32, i32) {
    %c0_i32 = arith.constant 0 : i32
    %c0_i32_0 = arith.constant 0 : i32
    %c0_i32_1 = arith.constant 0 : i32
    return %c0_i32, %c0_i32_0 : i32, i32
  }
  func.func @transform_14(%arg0: i32) -> (i32, i32) {
    %c0_i32 = arith.constant 0 : i32
    %c0_i32_0 = arith.constant 0 : i32
    %c0_i32_1 = arith.constant 0 : i32
    return %c0_i32, %c0_i32_0 : i32, i32
  }
}

</mosaic_0001>

<bundles_post_ra>
// kernel: tpu_custom_call.1
= control target key start
LH: loop header
LB: loop body
LE: loop exit
PB: predicated region body
PF: predicated region fallthrough
CT: control target
= control target key end

     0   :  { %s3086_s0 = inlined_call_operand.hbm [shape: f32[16,32], index: 0, kind: input, shape index: {}]   ;;  %s3087_s1 = inlined_call_operand.hbm [shape: f32[16,16], index: 1, kind: input, shape index: {}]   ;;  %s3088_s2 = inlined_call_operand.vmem [shape: f32[2,1,32], index: 2, kind: input, shape index: {}]   ;;  %s3089_s3 = inlined_call_operand.vmem [shape: f32[2,1,32], index: 3, kind: input, shape index: {}]   ;;  %s3090_s4 = inlined_call_operand.vmem [shape: bf16[2,32,96], index: 4, kind: input, shape index: {}]   ;;  %s3091_s5 = inlined_call_operand.vmem [shape: bf16[2,32,32], index: 5, kind: input, shape index: {}]   ;;  %s3092_s6 = inlined_call_operand.hbm [shape: f32[2,1,32], index: 6, kind: input, shape index: {}]   ;;  %s3093_s7 = inlined_call_operand.hbm [shape: f32[2,1,32], index: 7, kind: input, shape index: {}]   ;;  %s3094_s8 = inlined_call_operand.vmem [shape: bf16[2,32,64], index: 8, kind: input, shape index: {}]   ;;  %s3095_s9 = inlined_call_operand.hbm [shape: f32[2,1,64], index: 9, kind: input, shape index: {}]   ;;  %s3096_s10 = inlined_call_operand.vmem [shape: bf16[2,64,32], index: 10, kind: input, shape index: {}]   ;;  %s3097_s11 = inlined_call_operand.vmem [shape: f32[2,1,32], index: 11, kind: input, shape index: {}]   ;;  %s3098_s12 = inlined_call_operand.vmem [shape: f32[1,32], index: 12, kind: input, shape index: {}]   ;;  %s3099_s13 = inlined_call_operand.vmem [shape: f32[1,32], index: 13, kind: input, shape index: {}]   ;;  %s3100_s14 = inlined_call_operand.hbm [shape: f32[16,32], index: 14, kind: output, shape index: {}]  }
   0x1   :  { %3117 = sst [smem:[#allocation19_spill]] %s3086_s0 }
   0x2   :  { %3118 = sst [smem:[#allocation20_spill]] %s3092_s6 }
   0x3   :  { %3119 = sst [smem:[#allocation21_spill]] %s3097_s11 }
   0x4   :  { %3120 = sst [smem:[#allocation22_spill]] %s3098_s12 }
   0x5   :  { %3121 = sst [smem:[#allocation23_spill]] %s3099_s13 }
   0x6   :  { %3122 = sst [smem:[#allocation24_spill]] %s3100_s14 }
   0x7   :  { %19 = vsyncpa [#allocation4], 0 }
   0x8   :  { %20 = vsyncpa [#allocation7], 0 }
   0x9   :  { %21 = vsyncpa [#allocation5], 0  ;;  %s2585_s29 = smov 0   ;;  %s2587_s30 = smov 0  }
   0xa   :  { %s2589_s15 = smov 0   ;;  %s2591_s16 = smov 0  }
   0xb LB: > { %3123 = sst [smem:[#allocation16_spill]] %s2481_s15  ;;  %s2604_s17 = sadd.s32 4294967295, %s2485_s16   ;;  %s2485_s16 = sphi %s2591_s16, %s3156_s16   ;;  %s2481_s15 = sphi %s2589_s15, %s3158_s15   ;;  %s2477_s30 = sphi %s2587_s30, %s3160_s30   ;;  %s2473_s29 = sphi %s2585_s29, %s3159_s29  }
   0xc   : > { %p193_p0 = scmp.ne.s32.totalorder %s2477_s30, %s2473_s29  ;;  %p3104_p1 = scmp.eq.s32.totalorder %s2604_s17, 0 }
   0xd   : > { %p1927_p2 = scmp.ge.s32.totalorder %s2485_s16, 1  ;;  %p397_p3 = scmp.lt.s32.totalorder %s2485_s16, 3 }
   0xe   : > { %p2613_p5 = por %p3104_p1, %p193_p0  ;;  %s2487_s20 = smov [#allocation3]  }
   0xf   : > { %p2617_p6 = pnand %p1927_p2, %p397_p3  ;;  %s409_s21 = sshll.u32 %s2487_s20, 4  ;;  %s410_s21 = int_to_ptr.vmem [resolvable:$true] %s409_s21 }
  0x10   : > { %s3124_s18 = scalar_select %p2613_p5, 1, 0 }
  0x11   : > { %s3125_s19 = scalar_select %p2617_p6, 1, 0 }
  0x12   : > { %p2139_p7 = pneg %p2617_p6  ;;  %s2630_s23 = sadd.s32 1, %s2485_s16  }
  0x13   : > { %3127 = sst [smem:[#allocation17_spill]] %s2630_s23  ;;  %s180_s24 = sadd.s32 1, %s2481_s15 }
  0x14   : > { %p2625_p8 = pnand %p2139_p7, %p3104_p1  ;;  %s177_s25 = ssub.s32 %s2485_s16, %s2630_s23 }
  0x15   : > { %s3128_s0 = sld [smem:[#allocation19_spill]] }
  0x16   : > { %s3126_s22 = scalar_select %p2625_p8, 1, 0 }
  0x17   : > { %p3110_p10 = pneg %p2625_p8 }
  0x1b   : > { %s2267_s28 = scalar_lea.hbm %s3128_s0, 256 }
  0x1c   : > { %p2268_p9 = scmp.ne.s32.totalorder %s3128_s0, %s2267_s28  ;;  %p2274_p13 = scmp.lt.u32.totalorder %s2267_s28, %s3128_s0 }
  0x1e   : > { %p2270_p11 = pnand %p3110_p10, %p2268_p9 }
  0x20   : > { %p2271_p12 = pneg %p2270_p11 }
  0x22   : > { %p2276_p0 = pnand %p2274_p13, %p2271_p12 }
  0x24   : > { %2279 = shalt.err (!%p2276_p0)
}
  0x25   : > { %s2280_s23 = scalar_lea.vmem %s410_s21, 256  ;;  %p2288_p4 = scmp.lt.s32.totalorder %s410_s21, %s410_s21 }
  0x26   : > { %p2281_p2 = scmp.ne.s32.totalorder %s410_s21, %s2280_s23  ;;  %p2289_p1 = scmp.lt.s32.totalorder %s2280_s23, %s2280_s23 }
  0x28   : > { %p2283_p3 = pnand %p2281_p2, %p3110_p10  ;;  %p2290_p5 = por %p2289_p1, %p2288_p4 }
  0x2a   : > { %p2284_p7 = pneg %p2283_p3 }
  0x2c   : > { %p2291_p6 = pnand %p2290_p5, %p2284_p7 }
  0x2e   : > { %2294 = shalt.err (!%p2291_p6)
}
  0x2f   : > { %s3107_s26 = smov 128   ;;  %s3108_s13 = smov 8  }
  0x30   : > { %2142 = dma.hbm_to_vmem [thread:$0]  (!%p2625_p8), %s3128_s0, 256, %s410_s21, [#allocation4], %s3107_s26, %s3107_s26, %s3108_s13  }
  0x31   : > { %p178_p1 = scmp.eq.s32.totalorder %s177_s25, 0  ;;  %p187_p4 = scmp.ne.s32.totalorder %s2481_s15, %s2477_s30 }
  0x32   : > { %p188_p5 = scmp.eq.s32.totalorder %s2485_s16, 0  ;;  %p2158_p6 = scmp.lt.s32.totalorder %s2485_s16, 2 }
  0x33   : > { %s2665_s27 = scalar_select %p178_p1, %s2481_s15, %s180_s24  }
  0x34   : > { %p189_p9 = por %p188_p5, %p187_p4  ;;  %s470_s28 = sand.u32 1, %s2485_s16  }
  0x35   : > { %3129 = sst [smem:[#allocation18_spill]] %s2665_s27  ;;  %s2669_s29 = sand.u32 1, %s2481_s15  }
  0x36   : > { %s2672_s20 = sshll.u32 %s2485_s16, 4  ;;  %s3130_s6 = sld [smem:[#allocation20_spill]] }
  0x37   : > { %s473_s24 = scalar_lea.vmem [#allocation8], %s2669_s29  ;;  %p2683_p11 = pnand %p2158_p6, %p189_p9 }
  0x38   : > { %s480_s25 = sshll.u32 %s473_s24, 4  ;;  %s2691_s11 = scalar_lea.hbm %s3093_s7, %s2672_s20  ;;  %s2681_s25 = int_to_ptr.vmem [resolvable:$true] %s480_s25 }
  0x39   : > { %s3131_s14 = scalar_select %p2683_p11, 1, 0 }
  0x3a   : > { %s490_s12 = scalar_lea.vmem [#allocation9], %s2669_s29  ;;  %s2696_s13 = scalar_lea.sflag [#allocation4], %s470_s28 }
  0x3b   : > { %s2694_s26 = sshll.u32 %s490_s12, 4  ;;  %p2702_p13 = pneg %p2683_p11  ;;  %s498_s26 = int_to_ptr.vmem [resolvable:$true] %s2694_s26 }
  0x3c   : > { %s2678_s21 = scalar_lea.hbm %s3130_s6, %s2672_s20  ;;  %s2300_s27 = scalar_lea.hbm %s3130_s6, 32 }
  0x3d   : > { %s2295_s0 = scalar_lea.hbm %s2678_s21, 16  ;;  %p2301_p3 = scmp.lt.u32.totalorder %s2678_s21, %s3130_s6 }
  0x3e   : > { %p2296_p12 = scmp.ne.s32.totalorder %s2678_s21, %s2295_s0  ;;  %p2302_p7 = scmp.lt.u32.totalorder %s2300_s27, %s2295_s0 }
  0x3f   : > { %s3132_s24 = scalar_select %p2702_p13, 1, 0 }
  0x40   : > { %p2298_p0 = pnand %p2702_p13, %p2296_p12  ;;  %p2303_p1 = por %p2302_p7, %p2301_p3 }
  0x41   : > { %p2304_p4 = scmp.lt.u32.totalorder %s2295_s0, %s2678_s21 }
  0x42   : > { %p2299_p2 = pneg %p2298_p0 }
  0x43   : > { %p2305_p5 = por %p2304_p4, %p2303_p1 }
  0x45   : > { %p2306_p6 = pnand %p2305_p5, %p2299_p2 }
  0x47   : > { %2309 = shalt.err (!%p2306_p6)
}
  0x48   : > { %s2310_s28 = scalar_lea.vmem %s2681_s25, 16  ;;  %s2490_s16 = smov [#allocation8]  }
  0x49   : > { %p2311_p9 = scmp.ne.s32.totalorder %s2681_s25, %s2310_s28  ;;  %s2315_s23 = sshll.u32 %s2490_s16, 4  ;;  %s2316_s23 = int_to_ptr.vmem [resolvable:$false] %s2315_s23 }
  0x4a   : > { %s2317_s15 = scalar_lea.vmem %s2316_s23, 32  ;;  %p2318_p10 = scmp.lt.s32.totalorder %s2681_s25, %s2316_s23 }
  0x4b   : > { %p2313_p12 = pnand %p2311_p9, %p2702_p13  ;;  %p2319_p8 = scmp.lt.s32.totalorder %s2317_s15, %s2310_s28 }
  0x4d   : > { %p2314_p0 = pneg %p2313_p12  ;;  %p2320_p3 = por %p2319_p8, %p2318_p10 }
  0x4f   : > { %p2321_p7 = pnand %p2320_p3, %p2314_p0 }
  0x51   : > { %2324 = shalt.err (!%p2321_p7)
}
  0x52   : > { %2149 = dma.hbm_to_vmem [thread:$0]  (!%p2683_p11), %s2678_s21, 16, %s2681_s25, %s2696_s13  }
  0x53   : > { %s2325_s0 = scalar_lea.hbm %s2691_s11, 16  ;;  %s2330_s28 = scalar_lea.hbm %s3093_s7, 32 }
  0x54   : > { %p2326_p2 = scmp.ne.s32.totalorder %s2691_s11, %s2325_s0  ;;  %p2331_p10 = scmp.lt.u32.totalorder %s2691_s11, %s3093_s7 }
  0x55   : > { %p2332_p4 = scmp.lt.u32.totalorder %s2330_s28, %s2325_s0  ;;  %p2334_p6 = scmp.lt.u32.totalorder %s2325_s0, %s2691_s11 }
  0x56   : > { %p2328_p1 = pnand %p2326_p2, %p2702_p13 }
  0x57   : > { %p2333_p5 = por %p2332_p4, %p2331_p10 }
  0x58   : > { %p2329_p8 = pneg %p2328_p1 }
  0x59   : > { %p2335_p9 = por %p2334_p6, %p2333_p5 }
  0x5b   : > { %p2336_p12 = pnand %p2335_p9, %p2329_p8 }
  0x5d   : > { %2339 = shalt.err (!%p2336_p12)
}
  0x5e   : > { %s2340_s21 = scalar_lea.vmem %s498_s26, 16  ;;  %s2491_s25 = smov [#allocation9]  }
  0x5f   : > { %p2341_p0 = scmp.ne.s32.totalorder %s498_s26, %s2340_s21  ;;  %s2345_s15 = sshll.u32 %s2491_s25, 4  ;;  %s2346_s15 = int_to_ptr.vmem [resolvable:$false] %s2345_s15 }
  0x60   : > { %s2347_s27 = scalar_lea.vmem %s2346_s15, 32  ;;  %p2348_p2 = scmp.lt.s32.totalorder %s498_s26, %s2346_s15 }
  0x61   : > { %p2343_p3 = pnand %p2341_p0, %p2702_p13  ;;  %p2349_p1 = scmp.lt.s32.totalorder %s2347_s27, %s2340_s21 }
  0x63   : > { %p2344_p7 = pneg %p2343_p3  ;;  %p2350_p11 = por %p2349_p1, %p2348_p2 }
  0x65   : > { %p2351_p4 = pnand %p2350_p11, %p2344_p7 }
  0x67   : > { %2354 = shalt.err (!%p2351_p4)
}
  0x68   : > { %p3133_p10 = scmp.ne.s32.totalorder %s3131_s14, 0  ;;  %s2492_s0 = smov [#allocation6]  }
  0x69   : > { %s422_s12 = sshll.u32 %s2492_s0, 4  ;;  %s2749_s23 = scalar_lea.hbm %s3095_s9, %s2672_s20  ;;  %s423_s12 = int_to_ptr.vmem [resolvable:$true] %s422_s12 }
  0x6a   : > { %2152 = dma.hbm_to_vmem [thread:$0]  (!%p3133_p10), %s2691_s11, 16, %s498_s26, %s2696_s13  }
  0x6b   : > { %s2355_s15 = scalar_lea.hbm %s3087_s1, 256  ;;  %p3134_p8 = scmp.ne.s32.totalorder %s3126_s22, 0 }
  0x6c   : > { %p2356_p11 = scmp.ne.s32.totalorder %s3087_s1, %s2355_s15  ;;  %p2362_p12 = scmp.lt.u32.totalorder %s2355_s15, %s3087_s1 }
  0x6d   : > { %p3135_p5 = pneg %p3134_p8 }
  0x6f   : > { %p2358_p6 = pnand %p2356_p11, %p3135_p5 }
  0x71   : > { %p2359_p9 = pneg %p2358_p6 }
  0x73   : > { %p2364_p0 = pnand %p2362_p12, %p2359_p9 }
  0x75   : > { %2367 = shalt.err (!%p2364_p0)
}
  0x76   : > { %s2368_s20 = scalar_lea.vmem %s423_s12, 256  ;;  %p3136_p7 = pmov %p3135_p5 }
  0x77   : > { %p2369_p3 = scmp.ne.s32.totalorder %s423_s12, %s2368_s20  ;;  %p2376_p4 = scmp.lt.s32.totalorder %s423_s12, %s423_s12 }
  0x78   : > { %p2377_p10 = scmp.lt.s32.totalorder %s2368_s20, %s2368_s20 }
  0x79   : > { %p2371_p2 = pnand %p2369_p3, %p3136_p7 }
  0x7a   : > { %p2378_p13 = por %p2377_p10, %p2376_p4 }
  0x7b   : > { %p2372_p1 = pneg %p2371_p2 }
  0x7d   : > { %p2379_p5 = pnand %p2378_p13, %p2372_p1 }
  0x7f   : > { %2382 = shalt.err (!%p2379_p5)
}
  0x80   : > { %s3137_s6 = smov 8   ;;  %s3138_s0 = smov 128  }
  0x81   : > { %2145 = dma.hbm_to_vmem [thread:$0]  (!%p3134_p8), %s3087_s1, 256, %s423_s12, [#allocation7], %s3138_s0, %s3138_s0, %s3137_s6  }
  0x82   : > { %s515_s25 = scalar_lea.vmem [#allocation10], %s2669_s29  ;;  %s2383_s15 = scalar_lea.hbm %s2749_s23, 16 }
  0x83   : > { %s522_s21 = sshll.u32 %s515_s25, 4  ;;  %p2384_p13 = scmp.ne.s32.totalorder %s2749_s23, %s2383_s15  ;;  %s523_s21 = int_to_ptr.vmem [resolvable:$true] %s522_s21 }
  0x84   : > { %p3139_p10 = scmp.ne.s32.totalorder %s3132_s24, 0  ;;  %s2388_s26 = scalar_lea.hbm %s3095_s9, 32 }
  0x85   : > { %p2389_p9 = scmp.lt.u32.totalorder %s2749_s23, %s3095_s9  ;;  %p2390_p12 = scmp.lt.u32.totalorder %s2388_s26, %s2383_s15 }
  0x86   : > { %p2386_p11 = pnand %p2384_p13, %p3139_p10  ;;  %p2392_p3 = scmp.lt.u32.totalorder %s2383_s15, %s2749_s23 }
  0x87   : > { %p2391_p0 = por %p2390_p12, %p2389_p9 }
  0x88   : > { %p2387_p6 = pneg %p2386_p11 }
  0x89   : > { %p2393_p8 = por %p2392_p3, %p2391_p0 }
  0x8b   : > { %p2394_p7 = pnand %p2393_p8, %p2387_p6 }
  0x8d   : > { %2397 = shalt.err (!%p2394_p7)
}
  0x8e   : > { %s2398_s29 = scalar_lea.vmem %s523_s21, 16  ;;  %s2493_s12 = smov [#allocation10]  }
  0x8f   : > { %p2399_p2 = scmp.ne.s32.totalorder %s523_s21, %s2398_s29  ;;  %s2403_s6 = sshll.u32 %s2493_s12, 4  ;;  %s2404_s6 = int_to_ptr.vmem [resolvable:$false] %s2403_s6 }
  0x90   : > { %s2405_s0 = scalar_lea.vmem %s2404_s6, 32  ;;  %p2406_p5 = scmp.lt.s32.totalorder %s523_s21, %s2404_s6 }
  0x91   : > { %p2401_p1 = pnand %p2399_p2, %p3139_p10  ;;  %p2407_p13 = scmp.lt.s32.totalorder %s2405_s0, %s2398_s29 }
  0x93   : > { %p2402_p4 = pneg %p2401_p1  ;;  %p2408_p11 = por %p2407_p13, %p2406_p5 }
  0x95   : > { %p2409_p9 = pnand %p2408_p11, %p2402_p4 }
  0x97   : > { %2412 = shalt.err (!%p2409_p9)
}
  0x98   : > { %p3140_p12 = scmp.ne.s32.totalorder %s3131_s14, 0  ;;  %p3141_p6 = scmp.ne.s32.totalorder %s3125_s19, 0 }
  0x99   : > { %p3142_p10 = scmp.eq.s32.totalorder (!%p3141_p6), %s2604_s17, 0 }
  0x9a   : > { %2155 = dma.hbm_to_vmem [thread:$0]  (!%p3140_p12), %s2749_s23, 16, %s523_s21, %s2696_s13  }
  0x9b   : > { %545 = sbr.rel (%p3141_p6) target bundleno = 4221 (0x107d), region = 76 }
  0xa2   : > { %2456 = dma.done.wait (%p3142_p10), [#allocation4], 256   ;;  %p3143_p0 = pmov %p3142_p10 }
  0xa4   : > { %2458 = vsyncadd (%p3143_p0), [#allocation4], 4294967040  ;;  %p3144_p3 = pmov %p3143_p0 }
  0xa5   : > { %p3145_p8 = pmov %p3143_p0 }
  0xa6   : > { %2460 = dma.done.wait (%p3144_p3), [#allocation7], 256  }
  0xa7   : > { %2462 = vsyncadd (%p3145_p8), [#allocation7], 4294967040  ;;  %s555_s14 = sand.u32 1, %s2604_s17   ;;  %s2805_s13 = sand.u32 1, %s2477_s30  }
  0xa8   : > { %s556_s19 = scalar_lea.sflag [#allocation4], %s555_s14  ;;  %p3146_p7 = scmp.ne.s32.totalorder %s3124_s18, 0 }
  0xaa   : > { %2464 = dma.done.wait (%p3146_p7), %s556_s19, 48  }
  0xab   : > { %2466 = vsyncadd (%p3146_p7), %s556_s19, 4294967248  ;;  %p650_p2 = scmp.lt.s32.totalorder %s2604_s17, 1  ;;  %s3147_s26 = sld [smem:[#allocation21_spill]] }
  0xac   : > { %s566_s18 = scalar_lea.vmem [#allocation9], %s2805_s13  ;;  %s574_s25 = scalar_lea.vmem [#allocation10], %s2805_s13 }
  0xad   : > { %s2814_s23 = scalar_select %p650_p2, %s2604_s17, 1 }
  0xae   : > { %p3148_p1 = scmp.ne.s32.totalorder %s2604_s17, 0 }
  0xaf   : > { %s1982_s22 = sshll.u32 %s2814_s23, 4  ;;  %s1985_s27 = sshll.u32 %s2814_s23, 5  ;;  %v684_v0 = vld [vmem:[#allocation3] sm:$0xff] (!%p3148_p1)  ;;  %vm686_vm0 = vcmask (!%p3148_p1), 261120   ;;  %v685_v1 = vld [vmem:[#allocation3 + $0x8] sm:$0xff] (!%p3148_p1) }
  0xb0   : > { %s2829_s20 = scalar_lea.vmem %s3090_s4, %s1982_s22  ;;  %s2834_s6 = scalar_lea.vmem %s3091_s5, %s1982_s22  ;;  %687 = vst.msk [vmem:[#allocation2] sm:$0xff] (!%p3148_p1), %vm686_vm0, %v684_v0  ;;  %688 = vst.msk [vmem:[#allocation2 + $0x8] sm:$0xff] (!%p3148_p1), %vm686_vm0, %v685_v1 }
  0xb1   : > { %s2839_s19 = scalar_lea.vmem %s3094_s8, %s1982_s22  ;;  %s2844_s21 = scalar_lea.vmem %s3096_s10, %s1985_s27 }
  0xb2   : > { %s678_s11 = scalar_lea.vmem %s3147_s26, %s2814_s23  ;;  %683 = sbr.rel (%p3148_p1) target bundleno = 185 (0xb9), region = 100 }
  0xb9 PF: > { %v2854_v2 = vld [vmem:[#allocation2] sm:$0xff]  ;;  %vm695_vm1 = vcmask 261120   ;;  %v2856_v3 = vld [vmem:[#allocation2 + $0x8] sm:$0xff]  ;;  %v2494_v17 = vmov 0.0   ;;  %vm2495_vm2 = vmmov 0   ;;  %s3149_s27 = scalar_lea.vmem %s3088_s2, %s2814_s23  ;;  %s3150_s12 = scalar_lea.vmem %s3089_s3, %s2814_s23  ;;  %vm808_vm3 = vcmask 64512  }
  0xba   : > { %v696_v4 = vsel %vm695_vm1, %v2854_v2, 0.0  ;;  %v699_v5 = vsel %vm695_vm1, %v2856_v3, 0.0  ;;  %v2215_v16 = vld [vmem:[%s2829_s20] sm:$0xff]   ;;  %2021 = vmatprep.subr.bf16.mxu1 %v2494_v17  ;;  %2035 = vmatprep.subr.bf16.mxu0 %v2494_v17  ;;  %v2216_v18 = vld [vmem:[%s2829_s20 + $0x8] sm:$0xff]   ;;  %s2496_s0 = smov 88   ;;  %s2497_s14 = smov 96  }
  0xbb   : > { %697 = vadd.xlane.f32.xlu0 %v696_v4  ;;  %2022 = vmatpush3.bf16.msra.mxu1 %v2215_v16  ;;  %v1946_v27 = vld [vmem:[%s3149_s27] ss:$0 sm:$0xff]  ;;  %s2498_s28 = smov 120   ;;  %v2907_v48 = vld [vmem:[#allocation6 + $0x8] sm:$0xff]  ;;  %vm856_vm4 = vcmask 130048   ;;  %s2499_s16 = smov 64  }
  0xbc   : > { %2025 = vmatprep.mubr.msk.bf16.mxu1 %vm2495_vm2, %v2494_v17  ;;  %2023 = vmatprep.subr.bf16.mxu1 %v2494_v17  ;;  %v1947_v31 = vld [vmem:[%s3150_s12] ss:$0 sm:$0xff]  ;;  %s2500_s15 = smov 80   ;;  %s2501_s26 = smov 112   ;;  %vm1053_vm5 = vcmask 1043456   ;;  %vm1643_vm6 = vcmask 523264  }
  0xbd   : > { %2037 = vmatprep.mubr.msk.bf16.mxu0 %vm2495_vm2, %v2494_v17  ;;  %v2905_v46 = vld [vmem:[#allocation6] sm:$0xff]  ;;  %s2502_s24 = smov 56   ;;  %s2503_s22 = smov 48  }
  0xbe   : > { %s2504_s27 = smov 104   ;;  %s2505_s20 = smov 72  }
  0xbf   : > { %700 = vadd.xlane.f32.xlu0 %v699_v5  ;;  %2024 = vmatpush3.bf16.msra.mxu1 %v2216_v18  ;;  %s2506_s29 = smov 40   ;;  %p1975_p4 = scmp.ne.s32.totalorder %s2604_s17, 1 }
  0xc0   : > { %2029 = vmatprep.subr.bf16.mxu1 %v2494_v17 }
 0x148   : > { %v698_v6 = vpop.xlane.xlu0 %697 }
 0x149   : > { %v703_v7 = vmul.f32 0.03125, %v698_v6 }
 0x14b   : > { %v705_v8 = vsub.f32 %v2854_v2, %v703_v7 }
 0x14c   : > { %v701_v9 = vpop.xlane.xlu0 %700 }
 0x14d   : > { %v704_v10 = vmul.f32 0.03125, %v701_v9  ;;  %v707_v11 = vmul.f32 %v705_v8, %v705_v8 }
 0x14f   : > { %v706_v12 = vsub.f32 %v2856_v3, %v704_v10  ;;  %v709_v13 = vsel %vm695_vm1, %v707_v11, 0.0 }
 0x150   : > { %710 = vadd.xlane.f32.xlu1 %v709_v13 }
 0x151   : > { %v708_v14 = vmul.f32 %v706_v12, %v706_v12 }
 0x153   : > { %v712_v15 = vsel %vm695_vm1, %v708_v14, 0.0 }
 0x154   : > { %713 = vadd.xlane.f32.xlu1 %v712_v15 }
 0x1dd   : > { %v711_v19 = vpop.xlane.xlu1 %710 }
 0x1de   : > { %v715_v20 = vmul.f32 0.03125, %v711_v19 }
 0x1e0   : > { %v717_v21 = vadd.f32 1e-06, %v715_v20 }
 0x1e1   : > { %v714_v22 = vpop.xlane.xlu1 %713 }
 0x1e2   : > { %2223 = vrsqrt.f32 %v717_v21  ;;  %v716_v23 = vmul.f32 0.03125, %v714_v22 }
 0x1e4   : > { %v718_v24 = vadd.f32 1e-06, %v716_v23 }
 0x1e6   : > { %2225 = vrsqrt.f32 %v718_v24 }
 0x1ec   : > { %v2224_v25 = vpop.eup %2223 }
 0x1ed   : > { %v721_v26 = vmul.f32 %v2224_v25, %v705_v8 }
 0x1ef   : > { %v729_v30 = vmul.f32 %v1946_v27, %v721_v26 }
 0x1f0   : > { %v2226_v28 = vpop.eup %2225 }
 0x1f1   : > { %v722_v29 = vmul.f32 %v2226_v28, %v706_v12  ;;  %v737_v33 = vadd.f32 %v1947_v31, %v729_v30 }
 0x1f3   : > { %v730_v32 = vmul.f32 %v1946_v27, %v722_v29 }
 0x1f5   : > { %v738_v34 = vadd.f32 %v1947_v31, %v730_v32 }
 0x1f7   : > { %v739_v35 = vpack.c.bf16 %v738_v34, %v737_v33 }
 0x1f9   : > { %2026 = vmatmul.mubr.msk.bf16.vlgmr.msra.gmra.mrb[0].mxu1 %vm695_vm1, %v739_v35 }
 0x1fa   : > { %2031 = vmatprep.mubr.msk.bf16.mxu1 %vm2495_vm2, %v2494_v17 }
 0x2cc   : > { %v793_v36 = vpop.f32.mrb[0].mxu1 }
 0x2cd   : > { %v2027_v37 = vpop.f32.mrb[1].mxu1 }
 0x2ce   : > { %v796_v38 = vpop.f32.mrb[2].mxu1 }
 0x2cf   : > { %v2889_v39 = vpack.c.bf16 %v796_v38, %v793_v36  ;;  %v2028_v40 = vpop.f32.mrb[3].mxu1 }
 0x2d0   : > { %v800_v40 = vld [vmem:[%s2834_s6] sm:$0xf] }
 0x2d1   : > { %930 = vrot.lane.b32.xlu1 %v2889_v39, %s2496_s0  ;;  %806 = vrot.lane.b32.xlu0 %v2889_v39, %s2497_s14  ;;  %s3154_s0 = sld [smem:[#allocation23_spill]] (!%p1975_p4) }
 0x2d5   : > { %928 = vrot.lane.b32.xlu1 %v2889_v39, %s2498_s28 }
 0x343   : > { %v807_v41 = vpop.permute.xlu0 %806  ;;  %v931_v43 = vpop.permute.xlu1 %930 }
 0x344   : > { %v813_v42 = vsel %vm808_vm3, %v807_v41, 0  ;;  %v936_v44 = vsel %vm808_vm3, %v931_v43, 0  ;;  %v1102_v41 = vsel %vm1053_vm5, %v800_v40, 0 }
 0x345   : > { %2030 = vmatpush3.bf16.xpose.msra.mxu1 %v813_v42  ;;  %v801_v42 = vld [vmem:[%s2834_s6 + $0x4] sm:$0xf] }
 0x346   : > { %2041 = vmatprep.subr.bf16.mxu1 %v2494_v17  ;;  %v1055_v43 = vsel %vm1053_vm5, %v801_v42, 0 }
 0x347   : > { %v929_v45 = vpop.permute.xlu1 %928 }
 0x34c   : > { %2032 = vmatmul.mubr.msk.bf16.vlgmr.msra.gmra.mrb[4].mxu1 %vm808_vm3, %v2889_v39 }
 0x34d   : > { %2042 = vmatpush3.bf16.xpose.msra.mxu1 %v936_v44  ;;  %2043 = vmatprep.mubr.msk.bf16.mxu1 %vm2495_vm2, %v2494_v17 }
 0x34e   : > { %2053 = vmatprep.subr.bf16.mxu1 %v2494_v17 }
 0x354   : > { %2044 = vmatmul.mubr.msk.bf16.vlgmr.msra.gmra.mrb[8].mxu1 %vm808_vm3, %v929_v45 }
 0x355   : > { %2055 = vmatprep.mubr.msk.bf16.mxu1 %vm2495_vm2, %v2494_v17  ;;  %2054 = vmatpush3.bf16.msra.mxu1 %v1055_v43 }
 0x356   : > { %2065 = vmatprep.subr.bf16.mxu1 %v2494_v17 }
 0x41f   : > { %v849_v47 = vpop.f32.mrb[4].mxu1 }
 0x420   : > { %v850_v49 = vadd.f32 %v849_v47, %v2905_v46  ;;  %v2033_v50 = vpop.f32.mrb[5].mxu1 }
 0x421   : > { %v852_v51 = vpop.f32.mrb[6].mxu1 }
 0x422   : > { %v853_v52 = vadd.f32 %v852_v51, %v2907_v48  ;;  %v2034_v53 = vpop.f32.mrb[7].mxu1  ;;  %v857_v54 = vsel %vm856_vm4, %v850_v49, -inf }
 0x423   : > { %858 = vmax.xlane.f32.xlu1 %v857_v54 }
 0x424   : > { %v860_v55 = vsel %vm856_vm4, %v853_v52, -inf }
 0x425   : > { %861 = vmax.xlane.f32.xlu0 %v860_v55 }
 0x427   : > { %v972_v56 = vpop.f32.mrb[8].mxu1 }
 0x428   : > { %v973_v57 = vadd.f32 %v972_v56, %v2905_v46  ;;  %v2045_v58 = vpop.f32.mrb[9].mxu1 }
 0x429   : > { %v975_v59 = vpop.f32.mrb[10].mxu1 }
 0x42a   : > { %v976_v60 = vadd.f32 %v975_v59, %v2907_v48  ;;  %v2046_v61 = vpop.f32.mrb[11].mxu1  ;;  %v979_v62 = vsel %vm856_vm4, %v973_v57, -inf }
 0x42b   : > { %980 = vmax.xlane.f32.xlu0 %v979_v62 }
 0x42c   : > { %v982_v63 = vsel %vm856_vm4, %v976_v60, -inf }
 0x42f   : > { %983 = vmax.xlane.f32.xlu0 %v982_v63 }
 0x4b0   : > { %v859_v0 = vpop.xlane.xlu1 %858 }
 0x4b1   : > { %v863_v1 = vsub.f32 %v850_v49, %v859_v0 }
 0x4b2   : > { %v862_v4 = vpop.xlane.xlu0 %861 }
 0x4b3   : > { %v865_v5 = vmul.f32 1.442695, %v863_v1  ;;  %v864_v6 = vsub.f32 %v853_v52, %v862_v4 }
 0x4b5   : > { %2227 = vpow2.f32 %v865_v5  ;;  %v867_v7 = vmul.f32 1.442695, %v864_v6 }
 0x4b7   : > { %2229 = vpow2.f32 %v867_v7 }
 0x4b8   : > { %v981_v8 = vpop.xlane.xlu0 %980 }
 0x4b9   : > { %v985_v9 = vsub.f32 %v973_v57, %v981_v8 }
 0x4bb   : > { %v987_v10 = vmul.f32 1.442695, %v985_v9 }
 0x4bc   : > { %v984_v11 = vpop.xlane.xlu0 %983 }
 0x4bd   : > { %2231 = vpow2.f32 %v987_v10  ;;  %v986_v12 = vsub.f32 %v976_v60, %v984_v11 }
 0x4bf   : > { %v2228_v13 = vpop.eup %2227  ;;  %v989_v14 = vmul.f32 1.442695, %v986_v12 }
 0x4c0   : > { %v869_v15 = vsel %vm856_vm4, %v2228_v13, 0.0 }
 0x4c1   : > { %v2230_v16 = vpop.eup %2229  ;;  %2233 = vpow2.f32 %v989_v14  ;;  %870 = vadd.xlane.f32.xlu1 %v869_v15 }
 0x4c2   : > { %v872_v18 = vsel %vm856_vm4, %v2230_v16, 0.0 }
 0x4c3   : > { %873 = vadd.xlane.f32.xlu0 %v872_v18 }
 0x4c7   : > { %v2232_v19 = vpop.eup %2231 }
 0x4c8   : > { %v991_v20 = vsel %vm856_vm4, %v2232_v19, 0.0 }
 0x4c9   : > { %992 = vadd.xlane.f32.xlu1 %v991_v20 }
 0x4cb   : > { %v2234_v21 = vpop.eup %2233 }
 0x4cc   : > { %v994_v22 = vsel %vm856_vm4, %v2234_v21, 0.0 }
 0x4cd   : > { %995 = vadd.xlane.f32.xlu0 %v994_v22 }
 0x4da   : > { %880 = vrot.lane.b32.xlu1 %v2889_v39, %s2499_s16 }
 0x4de   : > { %1147 = vrot.lane.b32.xlu1 %v2889_v39, %s2500_s15 }
 0x4e2   : > { %1145 = vrot.lane.b32.xlu1 %v2889_v39, %s2501_s26 }
 0x4e3   : > { %1002 = vrot.lane.b32.xlu0 %v2889_v39, %s2502_s24 }
 0x54e   : > { %v871_v23 = vpop.xlane.xlu1 %870 }
 0x54f   : > { %2235 = vrcp.f32 %v871_v23 }
 0x550   : > { %v874_v24 = vpop.xlane.xlu0 %873 }
 0x551   : > { %2237 = vrcp.f32 %v874_v24 }
 0x556   : > { %v993_v25 = vpop.xlane.xlu1 %992 }
 0x557   : > { %2239 = vrcp.f32 %v993_v25 }
 0x559   : > { %v2236_v26 = vpop.eup %2235 }
 0x55a   : > { %v881_v27 = vpop.permute.xlu1 %880  ;;  %v996_v28 = vpop.xlane.xlu0 %995  ;;  %v877_v30 = vmul.f32 %v2236_v26, %v2228_v13 }
 0x55b   : > { %v2238_v29 = vpop.eup %2237  ;;  %2241 = vrcp.f32 %v996_v28  ;;  %2036 = vmatpush3.bf16.msra.mxu0 %v881_v27 }
 0x55c   : > { %2047 = vmatprep.subr.bf16.mxu0 %v2494_v17  ;;  %v878_v31 = vmul.f32 %v2238_v29, %v2230_v16 }
 0x55e   : > { %v1003_v32 = vpop.permute.xlu0 %1002  ;;  %v879_v33 = vpack.c.bf16 %v878_v31, %v877_v30  ;;  %v1148_v53 = vpop.permute.xlu1 %1147 }
 0x55f   : > { %v1153_v57 = vsel %vm808_vm3, %v1148_v53, 0 }
 0x560   : > { %2038 = vmatmul.mubr.msk.bf16.vlgmr.msra.gmra.mrb[0].mxu0 %vm856_vm4, %v879_v33 }
 0x561   : > { %2048 = vmatpush3.bf16.msra.mxu0 %v1003_v32  ;;  %2049 = vmatprep.mubr.msk.bf16.mxu0 %vm2495_vm2, %v2494_v17  ;;  %v2240_v34 = vpop.eup %2239 }
 0x562   : > { %2059 = vmatprep.subr.bf16.mxu0 %v2494_v17  ;;  %v999_v36 = vmul.f32 %v2240_v34, %v2232_v19  ;;  %v1146_v58 = vpop.permute.xlu1 %1145 }
 0x565   : > { %v2242_v35 = vpop.eup %2241 }
 0x566   : > { %v1000_v37 = vmul.f32 %v2242_v35, %v2234_v21 }
 0x568   : > { %v1001_v38 = vpack.c.bf16 %v1000_v37, %v999_v36  ;;  %v802_v37 = vld [vmem:[%s2834_s6 + $0x8] sm:$0xf] }
 0x56a   : > { %2050 = vmatmul.mubr.msk.bf16.vlgmr.msra.gmra.mrb[4].mxu0 %vm856_vm4, %v1001_v38  ;;  %v1271_v38 = vsel %vm1053_vm5, %v802_v37, 0 }
 0x56b   : > { %2061 = vmatprep.mubr.msk.bf16.mxu0 %vm2495_vm2, %v2494_v17  ;;  %2060 = vmatpush3.bf16.msra.mxu0 %v1102_v41 }
 0x56c   : > { %2071 = vmatprep.subr.bf16.mxu0 %v2494_v17 }
 0x633   : > { %v920_v44 = vpop.f32.mrb[0].mxu0 }
 0x634   : > { %v2039_v45 = vpop.f32.mrb[1].mxu0 }
 0x635   : > { %v923_v47 = vpop.f32.mrb[2].mxu0 }
 0x636   : > { %v927_v49 = vpack.c.bf16 %v923_v47, %v920_v44  ;;  %v2040_v50 = vpop.f32.mrb[3].mxu0 }
 0x638   : > { %2062 = vmatmul.mubr.msk.bf16.vlgmr.msra.gmra.mrb[8].mxu0 %vm808_vm3, %v927_v49 }
 0x639   : > { %2073 = vmatprep.mubr.msk.bf16.mxu0 %vm2495_vm2, %v2494_v17 }
 0x63d   : > { %v1042_v51 = vpop.f32.mrb[4].mxu0 }
 0x63e   : > { %v2051_v52 = vpop.f32.mrb[5].mxu0 }
 0x63f   : > { %v1045_v54 = vpop.f32.mrb[6].mxu0 }
 0x640   : > { %v1049_v55 = vpack.c.bf16 %v1045_v54, %v1042_v51  ;;  %v2052_v56 = vpop.f32.mrb[7].mxu0 }
 0x642   : > { %2056 = vmatmul.mubr.msk.bf16.vlgmr.msra.gmra.mrb[12].mxu1 %vm808_vm3, %v1049_v55 }
 0x643   : > { %2066 = vmatpush3.bf16.xpose.msra.mxu1 %v1153_v57  ;;  %2067 = vmatprep.mubr.msk.bf16.mxu1 %vm2495_vm2, %v2494_v17 }
 0x644   : > { %2077 = vmatprep.subr.bf16.mxu1 %v2494_v17 }
 0x64a   : > { %2068 = vmatmul.mubr.msk.bf16.vlgmr.msra.gmra.mrb[16].mxu1 %vm808_vm3, %v1146_v58 }
 0x64b   : > { %2079 = vmatprep.mubr.msk.bf16.mxu1 %vm2495_vm2, %v2494_v17  ;;  %2078 = vmatpush3.bf16.msra.mxu1 %v1271_v38 }
 0x64c   : > { %2089 = vmatprep.subr.bf16.mxu1 %v2494_v17 }
 0x70b   : > { %v1138_v59 = vpop.f32.mrb[8].mxu0 }
 0x70c   : > { %v2063_v60 = vpop.f32.mrb[9].mxu0 }
 0x70d   : > { %v1141_v61 = vpop.f32.mrb[10].mxu0 }
 0x70e   : > { %v2064_v62 = vpop.f32.mrb[11].mxu0 }
 0x715   : > { %v1091_v63 = vpop.f32.mrb[12].mxu1 }
 0x716   : > { %v2950_v0 = vadd.f32 %v1138_v59, %v1091_v63  ;;  %v2057_v1 = vpop.f32.mrb[13].mxu1  ;;  %v803_v63 = vld [vmem:[%s2834_s6 + $0xc] sm:$0xf]  ;;  %s3151_s6 = scalar_lea.vmem [#allocation8], %s2805_s13 }
 0x717   : > { %v1094_v4 = vpop.f32.mrb[14].mxu1  ;;  %v1442_v1 = vsel %vm1053_vm5, %v803_v63, 0  ;;  %v2222_v63 = vld [vmem:[%s2844_s21 + $0x18] sm:$0xff]  }
 0x718   : > { %v2952_v5 = vadd.f32 %v1141_v61, %v1094_v4  ;;  %v2058_v6 = vpop.f32.mrb[15].mxu1 }
 0x71d   : > { %v1189_v7 = vpop.f32.mrb[16].mxu1 }
 0x71e   : > { %v1190_v8 = vadd.f32 %v1189_v7, %v2905_v46  ;;  %v2069_v9 = vpop.f32.mrb[17].mxu1 }
 0x71f   : > { %v1192_v10 = vpop.f32.mrb[18].mxu1 }
 0x720   : > { %v1193_v11 = vadd.f32 %v1192_v10, %v2907_v48  ;;  %v2070_v12 = vpop.f32.mrb[19].mxu1  ;;  %v1196_v13 = vsel %vm856_vm4, %v1190_v8, -inf }
 0x721   : > { %1197 = vmax.xlane.f32.xlu1 %v1196_v13 }
 0x722   : > { %v1199_v14 = vsel %vm856_vm4, %v1193_v11, -inf }
 0x723   : > { %1200 = vmax.xlane.f32.xlu0 %v1199_v14 }
 0x732   : > { %1219 = vrot.lane.b32.xlu1 %v2889_v39, %s2503_s22 }
 0x736   : > { %1316 = vrot.lane.b32.xlu1 %v2889_v39, %s2504_s27 }
 0x7ae   : > { %v1198_v15 = vpop.xlane.xlu1 %1197 }
 0x7af   : > { %v1202_v16 = vsub.f32 %v1190_v8, %v1198_v15 }
 0x7b0   : > { %v1201_v18 = vpop.xlane.xlu0 %1200 }
 0x7b1   : > { %v1204_v19 = vmul.f32 1.442695, %v1202_v16  ;;  %v1203_v20 = vsub.f32 %v1193_v11, %v1201_v18 }
 0x7b2   : > { %v1220_v21 = vpop.permute.xlu1 %1219 }
 0x7b3   : > { %2243 = vpow2.f32 %v1204_v19  ;;  %v1206_v22 = vmul.f32 1.442695, %v1203_v20  ;;  %2072 = vmatpush3.bf16.msra.mxu0 %v1220_v21 }
 0x7b4   : > { %2083 = vmatprep.subr.bf16.mxu0 %v2494_v17 }
 0x7b5   : > { %2245 = vpow2.f32 %v1206_v22 }
 0x7b6   : > { %v1317_v36 = vpop.permute.xlu1 %1316 }
 0x7bd   : > { %v2244_v23 = vpop.eup %2243 }
 0x7be   : > { %v1208_v24 = vsel %vm856_vm4, %v2244_v23, 0.0 }
 0x7bf   : > { %v2246_v25 = vpop.eup %2245  ;;  %1209 = vadd.xlane.f32.xlu0 %v1208_v24 }
 0x7c0   : > { %v1211_v26 = vsel %vm856_vm4, %v2246_v25, 0.0 }
 0x7c3   : > { %1212 = vadd.xlane.f32.xlu0 %v1211_v26 }
 0x7d9   : > { %1318 = vrot.lane.b32.xlu0 %v2889_v39, %s2505_s20 }
 0x84c   : > { %v1210_v27 = vpop.xlane.xlu0 %1209 }
 0x84d   : > { %2247 = vrcp.f32 %v1210_v27 }
 0x850   : > { %v1213_v28 = vpop.xlane.xlu0 %1212 }
 0x851   : > { %2249 = vrcp.f32 %v1213_v28 }
 0x854   : > { %v1319_v33 = vpop.permute.xlu0 %1318 }
 0x855   : > { %v1324_v35 = vsel %vm808_vm3, %v1319_v33, 0 }
 0x857   : > { %v2248_v29 = vpop.eup %2247 }
 0x858   : > { %v1216_v31 = vmul.f32 %v2248_v29, %v2244_v23 }
 0x85b   : > { %v2250_v30 = vpop.eup %2249 }
 0x85c   : > { %v1217_v32 = vmul.f32 %v2250_v30, %v2246_v25 }
 0x85e   : > { %v1218_v34 = vpack.c.bf16 %v1217_v32, %v1216_v31 }
 0x860   : > { %2074 = vmatmul.mubr.msk.bf16.vlgmr.msra.gmra.mrb[12].mxu0 %vm856_vm4, %v1218_v34 }
 0x861   : > { %2084 = vmatpush3.bf16.xpose.msra.mxu0 %v1324_v35  ;;  %2085 = vmatprep.mubr.msk.bf16.mxu0 %vm2495_vm2, %v2494_v17 }
 0x862   : > { %2095 = vmatprep.subr.bf16.mxu0 %v2494_v17 }
 0x868   : > { %2086 = vmatmul.mubr.msk.bf16.vlgmr.msra.gmra.mrb[16].mxu0 %vm808_vm3, %v1317_v36 }
 0x869   : > { %2097 = vmatprep.mubr.msk.bf16.mxu0 %vm2495_vm2, %v2494_v17  ;;  %2096 = vmatpush3.bf16.msra.mxu0 %v1442_v1  ;;  %v1965_v1 = vld [vmem:[%s574_s25] ss:$0 sm:$0xff]  ;;  %s3153_s25 = sld [smem:[#allocation22_spill]] (!%p1975_p4) }
 0x86a   : > { %2109 = vmatprep.subr.bf16.mxu0 %v2494_v17 }
 0x933   : > { %v1259_v40 = vpop.f32.mrb[12].mxu0 }
 0x934   : > { %v2075_v41 = vpop.f32.mrb[13].mxu0 }
 0x935   : > { %v1262_v42 = vpop.f32.mrb[14].mxu0  ;;  %v2217_v41 = vld [vmem:[%s2839_s19] sm:$0xff]  }
 0x936   : > { %v1266_v43 = vpack.c.bf16 %v1262_v42, %v1259_v40  ;;  %v2076_v44 = vpop.f32.mrb[15].mxu0  ;;  %v2218_v42 = vld [vmem:[%s2839_s19 + $0x8] sm:$0xff]  }
 0x937   : > { %v2220_v44 = vld [vmem:[%s2844_s21 + $0x8] sm:$0xff]  }
 0x938   : > { %2080 = vmatmul.mubr.msk.bf16.vlgmr.msra.gmra.mrb[20].mxu1 %vm808_vm3, %v1266_v43  ;;  %v2219_v43 = vld [vmem:[%s2844_s21] sm:$0xff]  }
 0x939   : > { %2091 = vmatprep.mubr.msk.bf16.mxu1 %vm2495_vm2, %v2494_v17 }
 0x93b   : > { %v1360_v45 = vpop.f32.mrb[16].mxu0 }
 0x93c   : > { %v1361_v47 = vadd.f32 %v1360_v45, %v2905_v46  ;;  %v2087_v49 = vpop.f32.mrb[17].mxu0 }
 0x93d   : > { %v1363_v50 = vpop.f32.mrb[18].mxu0 }
 0x93e   : > { %v1364_v51 = vadd.f32 %v1363_v50, %v2907_v48  ;;  %v2088_v52 = vpop.f32.mrb[19].mxu0  ;;  %v1367_v53 = vsel %vm856_vm4, %v1361_v47, -inf }
 0x93f   : > { %1368 = vmax.xlane.f32.xlu1 %v1367_v53 }
 0x940   : > { %v1370_v54 = vsel %vm856_vm4, %v1364_v51, -inf }
 0x941   : > { %1371 = vmax.xlane.f32.xlu0 %v1370_v54 }
 0x9cc   : > { %v1369_v55 = vpop.xlane.xlu1 %1368 }
 0x9cd   : > { %v1373_v56 = vsub.f32 %v1361_v47, %v1369_v55  ;;  %v1963_v55 = vld [vmem:[%s3151_s6] ss:$0 sm:$0xff] }
 0x9ce   : > { %v1372_v57 = vpop.xlane.xlu0 %1371 }
 0x9cf   : > { %v1375_v58 = vmul.f32 1.442695, %v1373_v56  ;;  %v1374_v59 = vsub.f32 %v1364_v51, %v1372_v57 }
 0x9d1   : > { %2251 = vpow2.f32 %v1375_v58  ;;  %v1377_v60 = vmul.f32 1.442695, %v1374_v59  ;;  %v1964_v59 = vld [vmem:[%s566_s18] ss:$0 sm:$0xff] }
 0x9d3   : > { %2253 = vpow2.f32 %v1377_v60 }
 0x9db   : > { %v2252_v46 = vpop.eup %2251 }
 0x9dc   : > { %v1379_v61 = vsel %vm856_vm4, %v2252_v46, 0.0 }
 0x9dd   : > { %v2254_v48 = vpop.eup %2253  ;;  %1380 = vadd.xlane.f32.xlu0 %v1379_v61 }
 0x9de   : > { %v1382_v62 = vsel %vm856_vm4, %v2254_v48, 0.0 }
 0x9df   : > { %1383 = vadd.xlane.f32.xlu1 %v1382_v62  ;;  %v2221_v62 = vld [vmem:[%s2844_s21 + $0x10] sm:$0xff]  }
 0x9f3   : > { %1390 = vrot.lane.b32.xlu0 %v2889_v39, %s2506_s29 }
 0xa0b   : > { %v1307_v4 = vpop.f32.mrb[20].mxu1 }
 0xa0c   : > { %v1314_v6 = vadd.f32 %v1307_v4, %v2950_v0  ;;  %v2081_v7 = vpop.f32.mrb[21].mxu1 }
 0xa0d   : > { %v1310_v8 = vpop.f32.mrb[22].mxu1 }
 0xa0e   : > { %v1315_v9 = vadd.f32 %v1310_v8, %v2952_v5  ;;  %v2082_v10 = vpop.f32.mrb[23].mxu1 }
 0xa6a   : > { %v1381_v11 = vpop.xlane.xlu0 %1380 }
 0xa6b   : > { %2255 = vrcp.f32 %v1381_v11 }
 0xa6c   : > { %v1384_v12 = vpop.xlane.xlu1 %1383 }
 0xa6d   : > { %2257 = vrcp.f32 %v1384_v12 }
 0xa6e   : > { %v1391_v13 = vpop.permute.xlu0 %1390 }
 0xa6f   : > { %2090 = vmatpush3.bf16.msra.mxu1 %v1391_v13 }
 0xa70   : > { %2101 = vmatprep.subr.bf16.mxu1 %v2494_v17 }
 0xa75   : > { %v2256_v39 = vpop.eup %2255 }
 0xa76   : > { %v1387_v15 = vmul.f32 %v2256_v39, %v2252_v46 }
 0xa77   : > { %v2258_v14 = vpop.eup %2257 }
 0xa78   : > { %v1388_v16 = vmul.f32 %v2258_v14, %v2254_v48 }
 0xa7a   : > { %v1389_v18 = vpack.c.bf16 %v1388_v16, %v1387_v15 }
 0xa7c   : > { %2092 = vmatmul.mubr.msk.bf16.vlgmr.msra.gmra.mrb[24].mxu1 %vm856_vm4, %v1389_v18 }
 0xa7d   : > { %2105 = vmatprep.mubr.msk.bf16.mxu1 %vm2495_vm2, %v2494_v17  ;;  %2102 = vmatpush3.bf16.msra.mxu1 %v2217_v41 }
 0xa7e   : > { %2103 = vmatprep.subr.bf16.mxu1 %v2494_v17 }
 0xa81   : > { %2104 = vmatpush3.bf16.msra.mxu1 %v2218_v42 }
 0xb4f   : > { %v1430_v0 = vpop.f32.mrb[24].mxu1 }
 0xb50   : > { %v2093_v5 = vpop.f32.mrb[25].mxu1 }
 0xb51   : > { %v1433_v19 = vpop.f32.mrb[26].mxu1 }
 0xb52   : > { %v1437_v20 = vpack.c.bf16 %v1433_v19, %v1430_v0  ;;  %v2094_v21 = vpop.f32.mrb[27].mxu1 }
 0xb54   : > { %2098 = vmatmul.mubr.msk.bf16.vlgmr.msra.gmra.mrb[20].mxu0 %vm808_vm3, %v1437_v20 }
 0xb55   : > { %2117 = vmatprep.mubr.msk.bf16.mxu0 %vm2495_vm2, %v2494_v17  ;;  %2110 = vmatpush3.bf16.msra.mxu0 %v2219_v43 }
 0xb56   : > { %2111 = vmatprep.subr.bf16.mxu0 %v2494_v17 }
 0xb59   : > { %2112 = vmatpush3.bf16.msra.mxu0 %v2220_v44 }
 0xb5a   : > { %2113 = vmatprep.subr.bf16.mxu0 %v2494_v17 }
 0xb5d   : > { %2114 = vmatpush3.bf16.msra.mxu0 %v2221_v62 }
 0xb5e   : > { %2115 = vmatprep.subr.bf16.mxu0 %v2494_v17  ;;  %v1969_v17 = vld [vmem:[%s678_s11] ss:$0 sm:$0xff] }
 0xb61   : > { %2116 = vmatpush3.bf16.msra.mxu0 %v2222_v63 }
 0xc27   : > { %v1478_v22 = vpop.f32.mrb[20].mxu0 }
 0xc28   : > { %v1485_v23 = vadd.f32 %v1478_v22, %v1314_v6  ;;  %v2099_v24 = vpop.f32.mrb[21].mxu0 }
 0xc29   : > { %v1481_v25 = vpop.f32.mrb[22].mxu0 }
 0xc2a   : > { %v2998_v26 = vadd.f32 %v1485_v23, %v2854_v2  ;;  %v1486_v27 = vadd.f32 %v1481_v25, %v1315_v9  ;;  %v2100_v28 = vpop.f32.mrb[23].mxu0 }
 0xc2c   : > { %v3001_v29 = vadd.f32 %v1486_v27, %v2856_v3  ;;  %v1491_v30 = vsel %vm695_vm1, %v2998_v26, 0.0 }
 0xc2d   : > { %1492 = vadd.xlane.f32.xlu1 %v1491_v30 }
 0xc2e   : > { %v1494_v31 = vsel %vm695_vm1, %v3001_v29, 0.0 }
 0xc31   : > { %1495 = vadd.xlane.f32.xlu1 %v1494_v31 }
 0xcba   : > { %v1493_v32 = vpop.xlane.xlu1 %1492 }
 0xcbb   : > { %v1497_v33 = vmul.f32 0.03125, %v1493_v32 }
 0xcbd   : > { %v1499_v2 = vsub.f32 %v2998_v26, %v1497_v33 }
 0xcbe   : > { %v1496_v34 = vpop.xlane.xlu1 %1495 }
 0xcbf   : > { %v1498_v35 = vmul.f32 0.03125, %v1496_v34  ;;  %v1501_v3 = vmul.f32 %v1499_v2, %v1499_v2 }
 0xcc1   : > { %v1500_v36 = vsub.f32 %v3001_v29, %v1498_v35  ;;  %v1503_v37 = vsel %vm695_vm1, %v1501_v3, 0.0 }
 0xcc2   : > { %1504 = vadd.xlane.f32.xlu1 %v1503_v37  ;;  %v1976_v37 = vld [vmem:[%s3153_s25] ss:$0 sm:$0xff] (!%p1975_p4) }
 0xcc3   : > { %v1502_v38 = vmul.f32 %v1500_v36, %v1500_v36 }
 0xcc5   : > { %v1506_v40 = vsel %vm695_vm1, %v1502_v38, 0.0 }
 0xcc6   : > { %1507 = vadd.xlane.f32.xlu1 %v1506_v40  ;;  %v1977_v40 = vld [vmem:[%s3154_s0] ss:$0 sm:$0xff] (!%p1975_p4) }
 0xd4f   : > { %v1505_v45 = vpop.xlane.xlu1 %1504 }
 0xd50   : > { %v1509_v47 = vmul.f32 0.03125, %v1505_v45 }
 0xd52   : > { %v1511_v49 = vadd.f32 1e-06, %v1509_v47 }
 0xd53   : > { %v1508_v50 = vpop.xlane.xlu1 %1507 }
 0xd54   : > { %2259 = vrsqrt.f32 %v1511_v49  ;;  %v1510_v51 = vmul.f32 0.03125, %v1508_v50 }
 0xd56   : > { %v1512_v52 = vadd.f32 1e-06, %v1510_v51 }
 0xd58   : > { %2261 = vrsqrt.f32 %v1512_v52 }
 0xd5e   : > { %v2260_v53 = vpop.eup %2259 }
 0xd5f   : > { %v1515_v54 = vmul.f32 %v2260_v53, %v1499_v2 }
 0xd61   : > { %v1523_v57 = vmul.f32 %v1963_v55, %v1515_v54 }
 0xd62   : > { %v2262_v56 = vpop.eup %2261 }
 0xd63   : > { %v1516_v58 = vmul.f32 %v2262_v56, %v1500_v36  ;;  %v1531_v46 = vadd.f32 %v1964_v59, %v1523_v57 }
 0xd65   : > { %v1524_v60 = vmul.f32 %v1963_v55, %v1516_v58 }
 0xd67   : > { %v1532_v61 = vadd.f32 %v1964_v59, %v1524_v60 }
 0xd69   : > { %v1533_v48 = vpack.c.bf16 %v1532_v61, %v1531_v46 }
 0xd6b   : > { %2106 = vmatmul.mubr.msk.bf16.vlgmr.msra.gmra.mrb[28].mxu1 %vm695_vm1, %v1533_v48 }
 0xe3e   : > { %v1594_v4 = vpop.f32.mrb[28].mxu1 }
 0xe3f   : > { %v1595_v6 = vadd.f32 %v1965_v1, %v1594_v4  ;;  %v2107_v7 = vpop.f32.mrb[29].mxu1 }
 0xe40   : > { %v1597_v8 = vpop.f32.mrb[30].mxu1 }
 0xe41   : > { %v1598_v9 = vadd.f32 %v1965_v1, %v1597_v8  ;;  %v2108_v10 = vpop.f32.mrb[31].mxu1  ;;  %v1601_v11 = vmax.f32 %v1595_v6, 0.0 }
 0xe43   : > { %v1602_v12 = vmax.f32 %v1598_v9, 0.0 }
 0xe45   : > { %v1603_v13 = vpack.c.bf16 %v1602_v12, %v1601_v11 }
 0xe47   : > { %2118 = vmatmul.mubr.msk.bf16.vlgmr.msra.gmra.mrb[24].mxu0 %vm1643_vm6, %v1603_v13 }
 0xf1a   : > { %v1681_v39 = vpop.f32.mrb[24].mxu0 }
 0xf1b   : > { %v1682_v14 = vadd.f32 %v1969_v17, %v1681_v39  ;;  %v2119_v15 = vpop.f32.mrb[25].mxu0  ;;  %1695 = sbr.rel (%p1975_p4) target bundleno = 4189 (0x105d), region = 104 }
 0xf1c   : > { %v1684_v16 = vpop.f32.mrb[26].mxu0 }
 0xf1d   : > { %v1688_v18 = vadd.f32 %v1682_v14, %v2998_v26  ;;  %v1685_v0 = vadd.f32 %v1969_v17, %v1684_v16  ;;  %v2120_v5 = vpop.f32.mrb[27].mxu0 }
 0xf1f   : > { %1690 = vst.msk [vmem:[#allocation2] sm:$0xff] %vm695_vm1, %v1688_v18  ;;  %v1689_v19 = vadd.f32 %v1685_v0, %v3001_v29  ;;  %v1698_v20 = vsel (!%p1975_p4), %vm695_vm1, %v1688_v18, 0.0 }
 0xf20   : > { %1699 = vadd.xlane.f32.xlu0 (!%p1975_p4), %v1698_v20 }
 0xf21   : > { %1691 = vst.msk [vmem:[#allocation2 + $0x8] sm:$0xff] %vm695_vm1, %v1689_v19  ;;  %v1701_v21 = vsel (!%p1975_p4), %vm695_vm1, %v1689_v19, 0.0 }
 0xf24   : > { %1702 = vadd.xlane.f32.xlu0 %v1701_v21 }
 0xfad   : > { %v1700_v22 = vpop.xlane.xlu0 %1699 }
 0xfae   : > { %v1704_v23 = vmul.f32 0.03125, %v1700_v22 }
 0xfb0   : > { %v1706_v24 = vsub.f32 %v1688_v18, %v1704_v23 }
 0xfb1   : > { %v1703_v25 = vpop.xlane.xlu0 %1702 }
 0xfb2   : > { %v1705_v26 = vmul.f32 0.03125, %v1703_v25  ;;  %v1708_v27 = vmul.f32 %v1706_v24, %v1706_v24 }
 0xfb4   : > { %v1707_v28 = vsub.f32 %v1689_v19, %v1705_v26  ;;  %v1710_v29 = vsel %vm695_vm1, %v1708_v27, 0.0 }
 0xfb5   : > { %1711 = vadd.xlane.f32.xlu1 %v1710_v29 }
 0xfb6   : > { %v1709_v30 = vmul.f32 %v1707_v28, %v1707_v28 }
 0xfb8   : > { %v1713_v31 = vsel %vm695_vm1, %v1709_v30, 0.0 }
 0xfb9   : > { %1714 = vadd.xlane.f32.xlu1 %v1713_v31 }
0x1042   : > { %v1712_v32 = vpop.xlane.xlu1 %1711 }
0x1043   : > { %v1716_v33 = vmul.f32 0.03125, %v1712_v32 }
0x1045   : > { %v1718_v2 = vadd.f32 1e-06, %v1716_v33 }
0x1046   : > { %v1715_v34 = vpop.xlane.xlu1 %1714 }
0x1047   : > { %2263 = vrsqrt.f32 %v1718_v2  ;;  %v1717_v35 = vmul.f32 0.03125, %v1715_v34 }
0x1049   : > { %v1719_v3 = vadd.f32 1e-06, %v1717_v35 }
0x104b   : > { %2265 = vrsqrt.f32 %v1719_v3 }
0x1051   : > { %v2264_v36 = vpop.eup %2263 }
0x1052   : > { %v1722_v38 = vmul.f32 %v2264_v36, %v1706_v24 }
0x1054   : > { %v1730_v41 = vmul.f32 %v1976_v37, %v1722_v38 }
0x1055   : > { %v2266_v42 = vpop.eup %2265 }
0x1056   : > { %v1738_v43 = vadd.f32 %v1977_v40, %v1730_v41  ;;  %v1723_v44 = vmul.f32 %v2266_v42, %v1707_v28 }
0x1058   : > { %1740 = vst.msk [vmem:[#allocation11] sm:$0xff] %vm695_vm1, %v1738_v43  ;;  %v1731_v45 = vmul.f32 %v1976_v37, %v1723_v44 }
0x105a   : > { %v1739_v47 = vadd.f32 %v1977_v40, %v1731_v45 }
0x105c   : > { %1741 = vst.msk [vmem:[#allocation11 + $0x8] sm:$0xff] %vm695_vm1, %v1739_v47 }
0x105d PF: > { %p2161_p5 = scmp.eq.s32.totalorder %s2604_s17, 1  ;;  %s2507_s14 = smov [#allocation11]  }
0x105e   : > { %s1748_s28 = sshll.u32 %s2507_s14, 4  ;;  %s1749_s28 = int_to_ptr.vmem [resolvable:$true] %s1748_s28 }
0x105f   : > { %s2413_s16 = scalar_lea.vmem %s1749_s28, 256  ;;  %p2420_p12 = scmp.lt.s32.totalorder %s1749_s28, %s1749_s28 }
0x1060   : > { %p2414_p13 = scmp.ne.s32.totalorder %s1749_s28, %s2413_s16  ;;  %p2421_p6 = scmp.lt.s32.totalorder %s2413_s16, %s2413_s16 }
0x1062   : > { %p2415_p11 = pnand %p2414_p13, %p2161_p5  ;;  %p2422_p10 = por %p2421_p6, %p2420_p12 }
0x1064   : > { %p2416_p9 = pneg %p2415_p11 }
0x1066   : > { %p2423_p0 = pnand %p2422_p10, %p2416_p9 }
0x1068   : > { %2426 = shalt.err (!%p2423_p0)
}
0x1069   : > { %s3155_s24 = sld [smem:[#allocation24_spill]] }
0x106f   : > { %s2427_s22 = scalar_lea.hbm %s3155_s24, 256 }
0x1070   : > { %p2428_p3 = scmp.ne.s32.totalorder %s3155_s24, %s2427_s22  ;;  %p2433_p2 = scmp.lt.u32.totalorder %s2427_s22, %s3155_s24 }
0x1072   : > { %p2429_p8 = pnand %p2428_p3, %p2161_p5 }
0x1074   : > { %p2430_p7 = pneg %p2429_p8 }
0x1076   : > { %p2435_p1 = pnand %p2433_p2, %p2430_p7 }
0x1078   : > { %2438 = shalt.err (!%p2435_p1)
}
0x1079   : > { %s2508_s18 = smov 128   ;;  %s2509_s19 = smov 8  }
0x107a   : > { %2136 = dma.vmem_to_hbm [thread:$0]  (%p2161_p5), %s1749_s28, 256, %s3155_s24, [#allocation5], %s2508_s18, %s2508_s18, %s2509_s19  }
0x107b   : > { %2468 = dma.done.wait (%p2161_p5), [#allocation5], 256  }
0x107c   : > { %2470 = vsyncadd (%p2161_p5), [#allocation5], 4294967040 }
0x107d PF: > { %s3156_s16 = sld [smem:[#allocation17_spill]]  ;;  %s3157_s23 = sld [smem:[#allocation16_spill]] }
0x107e   : > { %s3158_s15 = sld [smem:[#allocation18_spill]]  ;;  %s3159_s29 = smov %s2477_s30 }
0x1083   : > { %p24_p4 = scmp.ge.s32.totalorder %s3156_s16, 4   ;;  %s3160_s30 = smov %s3157_s23 }
0x1085   :  { %26 = sbr.rel (!%p24_p4) target bundleno = 11 (0xb), region = 171 }
0x108c   :  { %1764 = vsyncpa [#allocation4], 1 }
0x108d   :  { %1766 = vsyncpa [#allocation4 + $0x1], 1 }
0x108e   :  { %1767 = vsyncpa [#allocation7], 1 }
0x108f   :  { %1768 = vsyncpa [#allocation5], 1 }
0x1090   :  { %1770 = vsyncpa [#allocation5 + $0x1], 1 }

</bundles_post_ra>
